<compile_context>
chip_gen: v5e
topology: v5e:2x2
jax: 0.10.0
libtpu: 0.0.40
codegen_flags: <defaults>
</compile_context>

<pallas_src>
import functools

import jax
import jax.numpy as jnp
from jax import lax
from jax.experimental import pallas as pl
from jax.experimental.pallas import tpu as pltpu


# ---------------------------------------------------------------------------
# Fused forward kernel (one grid step = one batch element)
# ---------------------------------------------------------------------------

def _fused_bert_kernel(emb_ref, mask_ref, eg_ref, eb_ref,
                       wqkv_ref, bqkv_ref, wo_ref, bo_ref, ln1g_ref, ln1b_ref,
                       w1_ref, b1_ref, w2_ref, b2_ref, ln2g_ref, ln2b_ref,
                       wp_ref, bp_ref, wf_ref, bf_ref, o_ref,
                       *, n_heads, n_layers, eps):
    S, H = emb_ref.shape[1], emb_ref.shape[2]
    dh = H // n_heads
    scale = 1.0 / (dh ** 0.5)

    def layernorm(x, g, b):
        mean = jnp.mean(x, axis=-1, keepdims=True)
        var = jnp.mean((x - mean) ** 2, axis=-1, keepdims=True)
        return (x - mean) * lax.rsqrt(var + eps) * g + b

    def gelu(x):
        # tanh-approx GELU ("gelu_new").
        # TODO(synk): HF BertModel default hidden_act is exact erf GELU; tanh
        # approximation deviates by <1e-3 -- confirm acceptable for checkpoint.
        return 0.5 * x * (1.0 + jnp.tanh(
            0.7978845608028654 * (x + 0.044715 * x * x * x)))

    # Embedding LayerNorm (no residual -> no zero array materialized).
    x = layernorm(emb_ref[0].astype(jnp.float32),
                  eg_ref[...].astype(jnp.float32),
                  eb_ref[...].astype(jnp.float32))                  # [S, H]

    add_mask = mask_ref[0].astype(jnp.float32)                      # [1, S] (key axis)

    for l in range(n_layers):
        # ---- self-attention: fused QKV matmul (bf16 operands, f32 accum) ----
        qkv = jnp.dot(x.astype(jnp.bfloat16), wqkv_ref[l],
                      preferred_element_type=jnp.float32) + bqkv_ref[l]   # [S, 3H]
        q, k, v = qkv[:, 0:H], qkv[:, H:2 * H], qkv[:, 2 * H:3 * H]
        wo_l = wo_ref[l]                                                  # [H, H] bf16
        attn_out = jnp.zeros((S, H), jnp.float32)
        for h in range(n_heads):
            sl = slice(h * dh, (h + 1) * dh)
            s = lax.dot_general(q[:, sl].astype(jnp.bfloat16),
                                k[:, sl].astype(jnp.bfloat16),
                                (((1,), (1,)), ((), ())),
                                preferred_element_type=jnp.float32) * scale + add_mask
            s = s - jnp.max(s, axis=-1, keepdims=True)
            p = jnp.exp(s)
            p = p * pl.reciprocal(jnp.sum(p, axis=-1, keepdims=True), approx=True)
            ctx_h = jnp.dot(p.astype(jnp.bfloat16), v[:, sl].astype(jnp.bfloat16),
                            preferred_element_type=jnp.float32)           # [S, dh]
            # Output projection folded into the head loop (no concat/transpose).
            attn_out = attn_out + jnp.dot(ctx_h.astype(jnp.bfloat16), wo_l[sl, :],
                                          preferred_element_type=jnp.float32)
        # fused add + LayerNorm epilogue
        x = layernorm(attn_out + bo_ref[l] + x, ln1g_ref[l], ln1b_ref[l])

        # ---- feed-forward (bf16 MXU, f32 elementwise) ----
        ffn = jnp.dot(x.astype(jnp.bfloat16), w1_ref[l],
                      preferred_element_type=jnp.float32) + b1_ref[l]
        ffn = gelu(ffn)
        ffn = jnp.dot(ffn.astype(jnp.bfloat16), w2_ref[l],
                      preferred_element_type=jnp.float32) + b2_ref[l]
        x = layernorm(ffn + x, ln2g_ref[l], ln2b_ref[l])

    # ---- pooler ([CLS]) + dropout(identity at inference) + fc + sigmoid ----
    cls = x[0:1, :]                                                        # [1, H]
    pooled = jnp.tanh(jnp.dot(cls.astype(jnp.bfloat16), wp_ref[...],
                              preferred_element_type=jnp.float32) + bp_ref[...])
    logits = jnp.dot(pooled, wf_ref[...],
                     preferred_element_type=jnp.float32) + bf_ref[...]     # [1, C]
    o_ref[...] = jax.nn.sigmoid(logits).reshape(o_ref.shape).astype(o_ref.dtype)


# ---------------------------------------------------------------------------
# Model config / params
# ---------------------------------------------------------------------------

CONFIG = dict(vocab=128, max_pos=32, type_vocab=2,
              hidden=32, heads=2, layers=2, intermediate=64, n_classes=1)


def init_params(key, cfg):
    H, I = cfg["hidden"], cfg["intermediate"]
    std = 0.02
    keys = iter(jax.random.split(key, 64))

    def w(shape):
        return (std * jax.random.normal(next(keys), shape)).astype(jnp.float32)

    params = dict(
        word_emb=w((cfg["vocab"], H)),
        pos_emb=w((cfg["max_pos"], H)),
        type_emb=w((cfg["type_vocab"], H)),
        emb_ln_g=jnp.ones((H,), jnp.float32),
        emb_ln_b=jnp.zeros((H,), jnp.float32),
        pooler_w=w((H, H)),
        pooler_b=jnp.zeros((H,), jnp.float32),
        fc_w=w((H, cfg["n_classes"])),          # Linear weight stored as [in, out]
        fc_b=jnp.zeros((cfg["n_classes"],), jnp.float32),
        layers=[],
    )
    for _ in range(cfg["layers"]):
        params["layers"].append(dict(
            wq=w((H, H)), bq=jnp.zeros((H,), jnp.float32),
            wk=w((H, H)), bk=jnp.zeros((H,), jnp.float32),
            wv=w((H, H)), bv=jnp.zeros((H,), jnp.float32),
            wo=w((H, H)), bo=jnp.zeros((H,), jnp.float32),
            ln1_g=jnp.ones((H,), jnp.float32), ln1_b=jnp.zeros((H,), jnp.float32),
            w1=w((H, I)), b1=jnp.zeros((I,), jnp.float32),
            w2=w((I, H)), b2=jnp.zeros((H,), jnp.float32),
            ln2_g=jnp.ones((H,), jnp.float32), ln2_b=jnp.zeros((H,), jnp.float32),
        ))
    return params


# ---------------------------------------------------------------------------
# Forward pass: embedding gathers in plain JAX, everything else in one kernel
# ---------------------------------------------------------------------------

def bert_classifier_forward(params, input_ids, attention_mask, token_type_ids, cfg):
    B, S = input_ids.shape
    H, NH, L = cfg["hidden"], cfg["heads"], cfg["layers"]
    I, C = cfg["intermediate"], cfg["n_classes"]

    # Data-dependent embedding gathers stay in plain JAX (glue).
    emb = (params["word_emb"][input_ids]
           + params["pos_emb"][:S][None, :, :]
           + params["type_emb"][token_type_ids]).astype(jnp.float32)     # [B, S, H]

    # BERT-style extended attention mask: additive, broadcast over query axis.
    add_mask = ((1.0 - attention_mask.astype(jnp.float32))
                * -10000.0).reshape(B, 1, S)

    # Stack layer params; fuse Q/K/V weights into [H, 3H]. Big matrices -> bf16.
    Ls = params["layers"]
    wqkv = jnp.stack([jnp.concatenate([l["wq"], l["wk"], l["wv"]], axis=1)
                      for l in Ls]).astype(jnp.bfloat16)                  # [L, H, 3H]
    bqkv = jnp.stack([jnp.concatenate([l["bq"], l["bk"], l["bv"]])[None]
                      for l in Ls])                                       # [L, 1, 3H]
    wo = jnp.stack([l["wo"] for l in Ls]).astype(jnp.bfloat16)            # [L, H, H]
    bo = jnp.stack([l["bo"][None] for l in Ls])                           # [L, 1, H]
    ln1g = jnp.stack([l["ln1_g"][None] for l in Ls])
    ln1b = jnp.stack([l["ln1_b"][None] for l in Ls])
    w1 = jnp.stack([l["w1"] for l in Ls]).astype(jnp.bfloat16)            # [L, H, I]
    b1 = jnp.stack([l["b1"][None] for l in Ls])
    w2 = jnp.stack([l["w2"] for l in Ls]).astype(jnp.bfloat16)            # [L, I, H]
    b2 = jnp.stack([l["b2"][None] for l in Ls])
    ln2g = jnp.stack([l["ln2_g"][None] for l in Ls])
    ln2b = jnp.stack([l["ln2_b"][None] for l in Ls])

    out = pl.pallas_call(
        functools.partial(_fused_bert_kernel, n_heads=NH, n_layers=L, eps=1e-12),
        grid=(B,),
        in_specs=[
            pl.BlockSpec((1, S, H), lambda b: (b, 0, 0)),        # embeddings
            pl.BlockSpec((1, 1, S), lambda b: (b, 0, 0)),        # additive mask
            pl.BlockSpec((1, H), lambda b: (0, 0)),              # emb LN gamma
            pl.BlockSpec((1, H), lambda b: (0, 0)),              # emb LN beta
            pl.BlockSpec((L, H, 3 * H), lambda b: (0, 0, 0)),    # fused QKV W
            pl.BlockSpec((L, 1, 3 * H), lambda b: (0, 0, 0)),    # fused QKV b
            pl.BlockSpec((L, H, H), lambda b: (0, 0, 0)),        # Wo
            pl.BlockSpec((L, 1, H), lambda b: (0, 0, 0)),        # bo
            pl.BlockSpec((L, 1, H), lambda b: (0, 0, 0)),        # ln1 gamma
            pl.BlockSpec((L, 1, H), lambda b: (0, 0, 0)),        # ln1 beta
            pl.BlockSpec((L, H, I), lambda b: (0, 0, 0)),        # W1
            pl.BlockSpec((L, 1, I), lambda b: (0, 0, 0)),        # b1
            pl.BlockSpec((L, I, H), lambda b: (0, 0, 0)),        # W2
            pl.BlockSpec((L, 1, H), lambda b: (0, 0, 0)),        # b2
            pl.BlockSpec((L, 1, H), lambda b: (0, 0, 0)),        # ln2 gamma
            pl.BlockSpec((L, 1, H), lambda b: (0, 0, 0)),        # ln2 beta
            pl.BlockSpec((H, H), lambda b: (0, 0)),              # pooler W
            pl.BlockSpec((1, H), lambda b: (0, 0)),              # pooler b
            pl.BlockSpec((H, C), lambda b: (0, 0)),              # fc W
            pl.BlockSpec((1, C), lambda b: (0, 0)),              # fc b
        ],
        out_specs=pl.BlockSpec((1, 1, C), lambda b: (b, 0, 0)),
        out_shape=jax.ShapeDtypeStruct((B, 1, C), jnp.float32),
        compiler_params=pltpu.CompilerParams(
            dimension_semantics=("parallel",)),
    )(emb, add_mask,
      params["emb_ln_g"].reshape(1, H), params["emb_ln_b"].reshape(1, H),
      wqkv, bqkv, wo, bo, ln1g, ln1b, w1, b1, w2, b2, ln2g, ln2b,
      params["pooler_w"].astype(jnp.bfloat16), params["pooler_b"].reshape(1, H),
      params["fc_w"], params["fc_b"].reshape(1, C))

    return out.reshape(B, C)


# ---------------------------------------------------------------------------
# Pure-JAX reference (f32) for correctness checking
# ---------------------------------------------------------------------------

def bert_reference(params, input_ids, attention_mask, token_type_ids, cfg):
    B, S = input_ids.shape
    H, NH = cfg["hidden"], cfg["heads"]
    dh = H // NH

    def ln(x, g, b, eps=1e-12):
        m = x.mean(-1, keepdims=True)
        v = ((x - m) ** 2).mean(-1, keepdims=True)
        return (x - m) / jnp.sqrt(v + eps) * g + b

    emb = (params["word_emb"][input_ids] + params["pos_emb"][:S][None]
           + params["type_emb"][token_type_ids])
    x = ln(emb, params["emb_ln_g"], params["emb_ln_b"])
    mask = ((1.0 - attention_mask.astype(jnp.float32)) * -10000.0)[:, None, None, :]
    for p in params["layers"]:
        q = x @ p["wq"] + p["bq"]
        k = x @ p["wk"] + p["bk"]
        v = x @ p["wv"] + p["bv"]

        def split(t):
            return t.reshape(B, S, NH, dh).transpose(0, 2, 1, 3)

        s = jnp.einsum("bhqd,bhkd->bhqk", split(q), split(k)) / jnp.sqrt(dh) + mask
        a = jax.nn.softmax(s, axis=-1)
        ctx = jnp.einsum("bhqk,bhkd->bhqd", a, split(v)).transpose(0, 2, 1, 3)
        ctx = ctx.reshape(B, S, H)
        x = ln(ctx @ p["wo"] + p["bo"] + x, p["ln1_g"], p["ln1_b"])
        h1 = x @ p["w1"] + p["b1"]
        h1 = 0.5 * h1 * (1.0 + jnp.tanh(0.7978845608028654 * (h1 + 0.044715 * h1 ** 3)))
        x = ln(h1 @ p["w2"] + p["b2"] + x, p["ln2_g"], p["ln2_b"])
    pooled = jnp.tanh(x[:, 0] @ params["pooler_w"] + params["pooler_b"])
    return jax.nn.sigmoid(pooled @ params["fc_w"] + params["fc_b"])


# ---------------------------------------------------------------------------
# Demo
# ---------------------------------------------------------------------------

if __name__ == "__main__":
    cfg = CONFIG
    B, S = 2, 8

    key = jax.random.PRNGKey(0)
    k_param, k_ids, k_type = jax.random.split(key, 3)

    params = init_params(k_param, cfg)
    input_ids = jax.random.randint(k_ids, (B, S), 0, cfg["vocab"], dtype=jnp.int32)
    token_type_ids = jax.random.randint(k_type, (B, S), 0, cfg["type_vocab"],
                                        dtype=jnp.int32)
    attention_mask = jnp.array(
        [[1, 1, 1, 1, 1, 1, 1, 1],
         [1, 1, 1, 1, 1, 0, 0, 0]], dtype=jnp.int32)

    fwd = jax.jit(functools.partial(bert_classifier_forward, cfg=cfg))
    out = jax.block_until_ready(fwd(params, input_ids, attention_mask, token_type_ids))

    ref = bert_reference(params, input_ids, attention_mask, token_type_ids, cfg)

    assert out.shape == (B, cfg["n_classes"])
    assert bool(jnp.all((out >= 0.0) & (out <= 1.0)))
    assert float(jnp.max(jnp.abs(out - ref))) < 5e-2   # bf16-weight tolerance
    print("KERNEL_OK")
</pallas_src>

<mosaic_0001>
module attributes {stable_mosaic.version = 11 : i64} {
  func.func @_fused_bert_kernel(%arg0: i32, %arg1: memref<1x8x32xf32, #tpu.memory_space<vmem>>, %arg2: memref<1x1x8xf32, #tpu.memory_space<vmem>>, %arg3: memref<1x32xf32, #tpu.memory_space<vmem>>, %arg4: memref<1x32xf32, #tpu.memory_space<vmem>>, %arg5: memref<2x32x96xbf16, #tpu.memory_space<vmem>>, %arg6: memref<2x1x96xf32, #tpu.memory_space<vmem>>, %arg7: memref<2x32x32xbf16, #tpu.memory_space<vmem>>, %arg8: memref<2x1x32xf32, #tpu.memory_space<vmem>>, %arg9: memref<2x1x32xf32, #tpu.memory_space<vmem>>, %arg10: memref<2x1x32xf32, #tpu.memory_space<vmem>>, %arg11: memref<2x32x64xbf16, #tpu.memory_space<vmem>>, %arg12: memref<2x1x64xf32, #tpu.memory_space<vmem>>, %arg13: memref<2x64x32xbf16, #tpu.memory_space<vmem>>, %arg14: memref<2x1x32xf32, #tpu.memory_space<vmem>>, %arg15: memref<2x1x32xf32, #tpu.memory_space<vmem>>, %arg16: memref<2x1x32xf32, #tpu.memory_space<vmem>>, %arg17: memref<32x32xbf16, #tpu.memory_space<vmem>>, %arg18: memref<1x32xf32, #tpu.memory_space<vmem>>, %arg19: memref<32x1xf32, #tpu.memory_space<vmem>>, %arg20: memref<1x1xf32, #tpu.memory_space<vmem>>, %arg21: memref<1x1x1xf32, #tpu.memory_space<vmem>>) attributes {dimension_semantics = [#tpu.dimension_semantics<parallel>], iteration_bounds = array<i64: 2>, scalar_prefetch = 0 : i64, scratch_operands = 0 : i64, tpu.core_type = #tpu.core_type<tc>, window_params = [{transform_indices = @transform_0, window_bounds = array<i64: 1, 8, 32>}, {transform_indices = @transform_1, window_bounds = array<i64: 1, 1, 8>}, {pipeline_mode = #tpu.pipeline_mode<synchronous>, transform_indices = @transform_2, window_bounds = array<i64: 1, 32>}, {pipeline_mode = #tpu.pipeline_mode<synchronous>, transform_indices = @transform_3, window_bounds = array<i64: 1, 32>}, {pipeline_mode = #tpu.pipeline_mode<synchronous>, transform_indices = @transform_4, window_bounds = array<i64: 2, 32, 96>}, {pipeline_mode = #tpu.pipeline_mode<synchronous>, transform_indices = @transform_5, window_bounds = array<i64: 2, 1, 96>}, {pipeline_mode = #tpu.pipeline_mode<synchronous>, transform_indices = @transform_6, window_bounds = array<i64: 2, 32, 32>}, {pipeline_mode = #tpu.pipeline_mode<synchronous>, transform_indices = @transform_7, window_bounds = array<i64: 2, 1, 32>}, {pipeline_mode = #tpu.pipeline_mode<synchronous>, transform_indices = @transform_8, window_bounds = array<i64: 2, 1, 32>}, {pipeline_mode = #tpu.pipeline_mode<synchronous>, transform_indices = @transform_9, window_bounds = array<i64: 2, 1, 32>}, {pipeline_mode = #tpu.pipeline_mode<synchronous>, transform_indices = @transform_10, window_bounds = array<i64: 2, 32, 64>}, {pipeline_mode = #tpu.pipeline_mode<synchronous>, transform_indices = @transform_11, window_bounds = array<i64: 2, 1, 64>}, {pipeline_mode = #tpu.pipeline_mode<synchronous>, transform_indices = @transform_12, window_bounds = array<i64: 2, 64, 32>}, {pipeline_mode = #tpu.pipeline_mode<synchronous>, transform_indices = @transform_13, window_bounds = array<i64: 2, 1, 32>}, {pipeline_mode = #tpu.pipeline_mode<synchronous>, transform_indices = @transform_14, window_bounds = array<i64: 2, 1, 32>}, {pipeline_mode = #tpu.pipeline_mode<synchronous>, transform_indices = @transform_15, window_bounds = array<i64: 2, 1, 32>}, {pipeline_mode = #tpu.pipeline_mode<synchronous>, transform_indices = @transform_16, window_bounds = array<i64: 32, 32>}, {pipeline_mode = #tpu.pipeline_mode<synchronous>, transform_indices = @transform_17, window_bounds = array<i64: 1, 32>}, {pipeline_mode = #tpu.pipeline_mode<synchronous>, transform_indices = @transform_18, window_bounds = array<i64: 32, 1>}, {pipeline_mode = #tpu.pipeline_mode<synchronous>, transform_indices = @transform_19, window_bounds = array<i64: 1, 1>}, {transform_indices = @transform_20, window_bounds = array<i64: 1, 1, 1>}]} {
    %c0 = arith.constant 0 : index
    %c0_0 = arith.constant 0 : index
    %c0_1 = arith.constant 0 : index
    %0 = vector.load %arg1[%c0, %c0_0, %c0_1] : memref<1x8x32xf32, #tpu.memory_space<vmem>>, vector<1x8x32xf32>
    %1 = vector.shape_cast %0 : vector<1x8x32xf32> to vector<8x32xf32>
    %c0_2 = arith.constant 0 : index
    %c0_3 = arith.constant 0 : index
    %2 = vector.load %arg3[%c0_2, %c0_3] : memref<1x32xf32, #tpu.memory_space<vmem>>, vector<1x32xf32>
    %c0_4 = arith.constant 0 : index
    %c0_5 = arith.constant 0 : index
    %3 = vector.load %arg4[%c0_4, %c0_5] : memref<1x32xf32, #tpu.memory_space<vmem>>, vector<1x32xf32>
    %cst = arith.constant dense<0.000000e+00> : vector<8xf32>
    %4 = vector.multi_reduction <add>, %1, %cst [1] : vector<8x32xf32> to vector<8xf32>
    %5 = vector.shape_cast %4 : vector<8xf32> to vector<8x1xf32>
    %cst_6 = arith.constant 3.200000e+01 : f32
    %6 = vector.broadcast %cst_6 : f32 to vector<8x1xf32>
    %7 = arith.divf %5, %6 : vector<8x1xf32>
    %8 = vector.broadcast %7 : vector<8x1xf32> to vector<8x32xf32>
    %9 = arith.subf %1, %8 : vector<8x32xf32>
    %10 = arith.mulf %9, %9 : vector<8x32xf32>
    %cst_7 = arith.constant dense<0.000000e+00> : vector<8xf32>
    %11 = vector.multi_reduction <add>, %10, %cst_7 [1] : vector<8x32xf32> to vector<8xf32>
    %12 = vector.shape_cast %11 : vector<8xf32> to vector<8x1xf32>
    %cst_8 = arith.constant 3.200000e+01 : f32
    %13 = vector.broadcast %cst_8 : f32 to vector<8x1xf32>
    %14 = arith.divf %12, %13 : vector<8x1xf32>
    %15 = vector.broadcast %7 : vector<8x1xf32> to vector<8x32xf32>
    %16 = arith.subf %1, %15 : vector<8x32xf32>
    %cst_9 = arith.constant 9.99999996E-13 : f32
    %17 = vector.broadcast %cst_9 : f32 to vector<8x1xf32>
    %18 = arith.addf %14, %17 : vector<8x1xf32>
    %19 = math.rsqrt %18 : vector<8x1xf32>
    %20 = vector.broadcast %19 : vector<8x1xf32> to vector<8x32xf32>
    %21 = arith.mulf %16, %20 : vector<8x32xf32>
    %22 = vector.broadcast %2 : vector<1x32xf32> to vector<8x32xf32>
    %23 = arith.mulf %21, %22 : vector<8x32xf32>
    %24 = vector.broadcast %3 : vector<1x32xf32> to vector<8x32xf32>
    %25 = arith.addf %23, %24 : vector<8x32xf32>
    %c0_10 = arith.constant 0 : index
    %c0_11 = arith.constant 0 : index
    %c0_12 = arith.constant 0 : index
    %26 = vector.load %arg2[%c0_10, %c0_11, %c0_12] : memref<1x1x8xf32, #tpu.memory_space<vmem>>, vector<1x1x8xf32>
    %27 = vector.shape_cast %26 : vector<1x1x8xf32> to vector<1x8xf32>
    %28 = arith.truncf %25 : vector<8x32xf32> to vector<8x32xbf16>
    %c0_13 = arith.constant 0 : index
    %c0_14 = arith.constant 0 : index
    %c0_15 = arith.constant 0 : index
    %29 = vector.load %arg5[%c0_13, %c0_14, %c0_15] : memref<2x32x96xbf16, #tpu.memory_space<vmem>>, vector<1x32x96xbf16>
    %30 = vector.shape_cast %29 : vector<1x32x96xbf16> to vector<32x96xbf16>
    %cst_16 = arith.constant dense<0.000000e+00> : vector<8x96xf32>
    %31 = tpu.matmul %28, %30, %cst_16 {dimension_numbers = #tpu.dot_dimension_numbers<[1], [0], [0], [1], [0, 0, 1, 1], [], []>} : vector<8x32xbf16>, vector<32x96xbf16>, vector<8x96xf32> -> vector<8x96xf32>
    %c0_17 = arith.constant 0 : index
    %c0_18 = arith.constant 0 : index
    %c0_19 = arith.constant 0 : index
    %32 = vector.load %arg6[%c0_17, %c0_18, %c0_19] : memref<2x1x96xf32, #tpu.memory_space<vmem>>, vector<1x1x96xf32>
    %33 = vector.shape_cast %32 : vector<1x1x96xf32> to vector<1x96xf32>
    %34 = vector.broadcast %33 : vector<1x96xf32> to vector<8x96xf32>
    %35 = arith.addf %31, %34 : vector<8x96xf32>
    %36 = vector.extract_strided_slice %35 {offsets = [0, 0], sizes = [8, 32], strides = [1, 1]} : vector<8x96xf32> to vector<8x32xf32>
    %37 = vector.extract_strided_slice %35 {offsets = [0, 32], sizes = [8, 32], strides = [1, 1]} : vector<8x96xf32> to vector<8x32xf32>
    %38 = vector.extract_strided_slice %35 {offsets = [0, 64], sizes = [8, 32], strides = [1, 1]} : vector<8x96xf32> to vector<8x32xf32>
    %c0_20 = arith.constant 0 : index
    %c0_21 = arith.constant 0 : index
    %c0_22 = arith.constant 0 : index
    %39 = vector.load %arg7[%c0_20, %c0_21, %c0_22] : memref<2x32x32xbf16, #tpu.memory_space<vmem>>, vector<1x32x32xbf16>
    %40 = vector.shape_cast %39 : vector<1x32x32xbf16> to vector<32x32xbf16>
    %cst_23 = arith.constant 0.000000e+00 : f32
    %41 = vector.broadcast %cst_23 : f32 to vector<8x32xf32>
    %42 = vector.extract_strided_slice %36 {offsets = [0, 0], sizes = [8, 16], strides = [1, 1]} : vector<8x32xf32> to vector<8x16xf32>
    %43 = arith.truncf %42 : vector<8x16xf32> to vector<8x16xbf16>
    %44 = vector.extract_strided_slice %37 {offsets = [0, 0], sizes = [8, 16], strides = [1, 1]} : vector<8x32xf32> to vector<8x16xf32>
    %45 = arith.truncf %44 : vector<8x16xf32> to vector<8x16xbf16>
    %cst_24 = arith.constant dense<0.000000e+00> : vector<8x8xf32>
    %46 = tpu.matmul %43, %45, %cst_24 {dimension_numbers = #tpu.dot_dimension_numbers<[1], [1], [0], [0], [0, 0, 1, 0], [], []>} : vector<8x16xbf16>, vector<8x16xbf16>, vector<8x8xf32> -> vector<8x8xf32>
    %cst_25 = arith.constant 2.500000e-01 : f32
    %47 = vector.broadcast %cst_25 : f32 to vector<8x8xf32>
    %48 = arith.mulf %46, %47 : vector<8x8xf32>
    %49 = vector.broadcast %27 : vector<1x8xf32> to vector<8x8xf32>
    %50 = arith.addf %48, %49 : vector<8x8xf32>
    %cst_26 = arith.constant dense<0xFF800000> : vector<8xf32>
    %51 = vector.multi_reduction <maximumf>, %50, %cst_26 [1] : vector<8x8xf32> to vector<8xf32>
    %52 = vector.shape_cast %51 : vector<8xf32> to vector<8x1xf32>
    %53 = vector.broadcast %52 : vector<8x1xf32> to vector<8x8xf32>
    %54 = arith.subf %50, %53 : vector<8x8xf32>
    %55 = math.exp %54 : vector<8x8xf32>
    %cst_27 = arith.constant dense<0.000000e+00> : vector<8xf32>
    %56 = vector.multi_reduction <add>, %55, %cst_27 [1] : vector<8x8xf32> to vector<8xf32>
    %57 = vector.shape_cast %56 : vector<8xf32> to vector<8x1xf32>
    %58 = tpu.reciprocal %57 {approx = true} : vector<8x1xf32> -> vector<8x1xf32>
    %59 = vector.broadcast %58 : vector<8x1xf32> to vector<8x8xf32>
    %60 = arith.mulf %55, %59 : vector<8x8xf32>
    %61 = arith.truncf %60 : vector<8x8xf32> to vector<8x8xbf16>
    %62 = vector.extract_strided_slice %38 {offsets = [0, 0], sizes = [8, 16], strides = [1, 1]} : vector<8x32xf32> to vector<8x16xf32>
    %63 = arith.truncf %62 : vector<8x16xf32> to vector<8x16xbf16>
    %cst_28 = arith.constant dense<0.000000e+00> : vector<8x16xf32>
    %64 = tpu.matmul %61, %63, %cst_28 {dimension_numbers = #tpu.dot_dimension_numbers<[1], [0], [0], [1], [0, 0, 1, 1], [], []>} : vector<8x8xbf16>, vector<8x16xbf16>, vector<8x16xf32> -> vector<8x16xf32>
    %65 = arith.truncf %64 : vector<8x16xf32> to vector<8x16xbf16>
    %66 = vector.extract_strided_slice %40 {offsets = [0, 0], sizes = [16, 32], strides = [1, 1]} : vector<32x32xbf16> to vector<16x32xbf16>
    %cst_29 = arith.constant dense<0.000000e+00> : vector<8x32xf32>
    %67 = tpu.matmul %65, %66, %cst_29 {dimension_numbers = #tpu.dot_dimension_numbers<[1], [0], [0], [1], [0, 0, 1, 1], [], []>} : vector<8x16xbf16>, vector<16x32xbf16>, vector<8x32xf32> -> vector<8x32xf32>
    %68 = arith.addf %41, %67 : vector<8x32xf32>
    %69 = vector.extract_strided_slice %36 {offsets = [0, 16], sizes = [8, 16], strides = [1, 1]} : vector<8x32xf32> to vector<8x16xf32>
    %70 = arith.truncf %69 : vector<8x16xf32> to vector<8x16xbf16>
    %71 = vector.extract_strided_slice %37 {offsets = [0, 16], sizes = [8, 16], strides = [1, 1]} : vector<8x32xf32> to vector<8x16xf32>
    %72 = arith.truncf %71 : vector<8x16xf32> to vector<8x16xbf16>
    %cst_30 = arith.constant dense<0.000000e+00> : vector<8x8xf32>
    %73 = tpu.matmul %70, %72, %cst_30 {dimension_numbers = #tpu.dot_dimension_numbers<[1], [1], [0], [0], [0, 0, 1, 0], [], []>} : vector<8x16xbf16>, vector<8x16xbf16>, vector<8x8xf32> -> vector<8x8xf32>
    %cst_31 = arith.constant 2.500000e-01 : f32
    %74 = vector.broadcast %cst_31 : f32 to vector<8x8xf32>
    %75 = arith.mulf %73, %74 : vector<8x8xf32>
    %76 = vector.broadcast %27 : vector<1x8xf32> to vector<8x8xf32>
    %77 = arith.addf %75, %76 : vector<8x8xf32>
    %cst_32 = arith.constant dense<0xFF800000> : vector<8xf32>
    %78 = vector.multi_reduction <maximumf>, %77, %cst_32 [1] : vector<8x8xf32> to vector<8xf32>
    %79 = vector.shape_cast %78 : vector<8xf32> to vector<8x1xf32>
    %80 = vector.broadcast %79 : vector<8x1xf32> to vector<8x8xf32>
    %81 = arith.subf %77, %80 : vector<8x8xf32>
    %82 = math.exp %81 : vector<8x8xf32>
    %cst_33 = arith.constant dense<0.000000e+00> : vector<8xf32>
    %83 = vector.multi_reduction <add>, %82, %cst_33 [1] : vector<8x8xf32> to vector<8xf32>
    %84 = vector.shape_cast %83 : vector<8xf32> to vector<8x1xf32>
    %85 = tpu.reciprocal %84 {approx = true} : vector<8x1xf32> -> vector<8x1xf32>
    %86 = vector.broadcast %85 : vector<8x1xf32> to vector<8x8xf32>
    %87 = arith.mulf %82, %86 : vector<8x8xf32>
    %88 = arith.truncf %87 : vector<8x8xf32> to vector<8x8xbf16>
    %89 = vector.extract_strided_slice %38 {offsets = [0, 16], sizes = [8, 16], strides = [1, 1]} : vector<8x32xf32> to vector<8x16xf32>
    %90 = arith.truncf %89 : vector<8x16xf32> to vector<8x16xbf16>
    %cst_34 = arith.constant dense<0.000000e+00> : vector<8x16xf32>
    %91 = tpu.matmul %88, %90, %cst_34 {dimension_numbers = #tpu.dot_dimension_numbers<[1], [0], [0], [1], [0, 0, 1, 1], [], []>} : vector<8x8xbf16>, vector<8x16xbf16>, vector<8x16xf32> -> vector<8x16xf32>
    %92 = arith.truncf %91 : vector<8x16xf32> to vector<8x16xbf16>
    %93 = vector.extract_strided_slice %40 {offsets = [16, 0], sizes = [16, 32], strides = [1, 1]} : vector<32x32xbf16> to vector<16x32xbf16>
    %cst_35 = arith.constant dense<0.000000e+00> : vector<8x32xf32>
    %94 = tpu.matmul %92, %93, %cst_35 {dimension_numbers = #tpu.dot_dimension_numbers<[1], [0], [0], [1], [0, 0, 1, 1], [], []>} : vector<8x16xbf16>, vector<16x32xbf16>, vector<8x32xf32> -> vector<8x32xf32>
    %95 = arith.addf %68, %94 : vector<8x32xf32>
    %c0_36 = arith.constant 0 : index
    %c0_37 = arith.constant 0 : index
    %c0_38 = arith.constant 0 : index
    %96 = vector.load %arg8[%c0_36, %c0_37, %c0_38] : memref<2x1x32xf32, #tpu.memory_space<vmem>>, vector<1x1x32xf32>
    %97 = vector.shape_cast %96 : vector<1x1x32xf32> to vector<1x32xf32>
    %98 = vector.broadcast %97 : vector<1x32xf32> to vector<8x32xf32>
    %99 = arith.addf %95, %98 : vector<8x32xf32>
    %100 = arith.addf %99, %25 : vector<8x32xf32>
    %c0_39 = arith.constant 0 : index
    %c0_40 = arith.constant 0 : index
    %c0_41 = arith.constant 0 : index
    %101 = vector.load %arg9[%c0_39, %c0_40, %c0_41] : memref<2x1x32xf32, #tpu.memory_space<vmem>>, vector<1x1x32xf32>
    %102 = vector.shape_cast %101 : vector<1x1x32xf32> to vector<1x32xf32>
    %c0_42 = arith.constant 0 : index
    %c0_43 = arith.constant 0 : index
    %c0_44 = arith.constant 0 : index
    %103 = vector.load %arg10[%c0_42, %c0_43, %c0_44] : memref<2x1x32xf32, #tpu.memory_space<vmem>>, vector<1x1x32xf32>
    %104 = vector.shape_cast %103 : vector<1x1x32xf32> to vector<1x32xf32>
    %cst_45 = arith.constant dense<0.000000e+00> : vector<8xf32>
    %105 = vector.multi_reduction <add>, %100, %cst_45 [1] : vector<8x32xf32> to vector<8xf32>
    %106 = vector.shape_cast %105 : vector<8xf32> to vector<8x1xf32>
    %cst_46 = arith.constant 3.200000e+01 : f32
    %107 = vector.broadcast %cst_46 : f32 to vector<8x1xf32>
    %108 = arith.divf %106, %107 : vector<8x1xf32>
    %109 = vector.broadcast %108 : vector<8x1xf32> to vector<8x32xf32>
    %110 = arith.subf %100, %109 : vector<8x32xf32>
    %111 = arith.mulf %110, %110 : vector<8x32xf32>
    %cst_47 = arith.constant dense<0.000000e+00> : vector<8xf32>
    %112 = vector.multi_reduction <add>, %111, %cst_47 [1] : vector<8x32xf32> to vector<8xf32>
    %113 = vector.shape_cast %112 : vector<8xf32> to vector<8x1xf32>
    %cst_48 = arith.constant 3.200000e+01 : f32
    %114 = vector.broadcast %cst_48 : f32 to vector<8x1xf32>
    %115 = arith.divf %113, %114 : vector<8x1xf32>
    %116 = vector.broadcast %108 : vector<8x1xf32> to vector<8x32xf32>
    %117 = arith.subf %100, %116 : vector<8x32xf32>
    %cst_49 = arith.constant 9.99999996E-13 : f32
    %118 = vector.broadcast %cst_49 : f32 to vector<8x1xf32>
    %119 = arith.addf %115, %118 : vector<8x1xf32>
    %120 = math.rsqrt %119 : vector<8x1xf32>
    %121 = vector.broadcast %120 : vector<8x1xf32> to vector<8x32xf32>
    %122 = arith.mulf %117, %121 : vector<8x32xf32>
    %123 = vector.broadcast %102 : vector<1x32xf32> to vector<8x32xf32>
    %124 = arith.mulf %122, %123 : vector<8x32xf32>
    %125 = vector.broadcast %104 : vector<1x32xf32> to vector<8x32xf32>
    %126 = arith.addf %124, %125 : vector<8x32xf32>
    %127 = arith.truncf %126 : vector<8x32xf32> to vector<8x32xbf16>
    %c0_50 = arith.constant 0 : index
    %c0_51 = arith.constant 0 : index
    %c0_52 = arith.constant 0 : index
    %128 = vector.load %arg11[%c0_50, %c0_51, %c0_52] : memref<2x32x64xbf16, #tpu.memory_space<vmem>>, vector<1x32x64xbf16>
    %129 = vector.shape_cast %128 : vector<1x32x64xbf16> to vector<32x64xbf16>
    %cst_53 = arith.constant dense<0.000000e+00> : vector<8x64xf32>
    %130 = tpu.matmul %127, %129, %cst_53 {dimension_numbers = #tpu.dot_dimension_numbers<[1], [0], [0], [1], [0, 0, 1, 1], [], []>} : vector<8x32xbf16>, vector<32x64xbf16>, vector<8x64xf32> -> vector<8x64xf32>
    %c0_54 = arith.constant 0 : index
    %c0_55 = arith.constant 0 : index
    %c0_56 = arith.constant 0 : index
    %131 = vector.load %arg12[%c0_54, %c0_55, %c0_56] : memref<2x1x64xf32, #tpu.memory_space<vmem>>, vector<1x1x64xf32>
    %132 = vector.shape_cast %131 : vector<1x1x64xf32> to vector<1x64xf32>
    %133 = vector.broadcast %132 : vector<1x64xf32> to vector<8x64xf32>
    %134 = arith.addf %130, %133 : vector<8x64xf32>
    %cst_57 = arith.constant 5.000000e-01 : f32
    %135 = vector.broadcast %cst_57 : f32 to vector<8x64xf32>
    %136 = arith.mulf %135, %134 : vector<8x64xf32>
    %cst_58 = arith.constant 4.471500e-02 : f32
    %137 = vector.broadcast %cst_58 : f32 to vector<8x64xf32>
    %138 = arith.mulf %137, %134 : vector<8x64xf32>
    %139 = arith.mulf %138, %134 : vector<8x64xf32>
    %140 = arith.mulf %139, %134 : vector<8x64xf32>
    %141 = arith.addf %134, %140 : vector<8x64xf32>
    %cst_59 = arith.constant 0.797884583 : f32
    %142 = vector.broadcast %cst_59 : f32 to vector<8x64xf32>
    %143 = arith.mulf %142, %141 : vector<8x64xf32>
    %144 = math.tanh %143 : vector<8x64xf32>
    %cst_60 = arith.constant 1.000000e+00 : f32
    %145 = vector.broadcast %cst_60 : f32 to vector<8x64xf32>
    %146 = arith.addf %145, %144 : vector<8x64xf32>
    %147 = arith.mulf %136, %146 : vector<8x64xf32>
    %148 = arith.truncf %147 : vector<8x64xf32> to vector<8x64xbf16>
    %c0_61 = arith.constant 0 : index
    %c0_62 = arith.constant 0 : index
    %c0_63 = arith.constant 0 : index
    %149 = vector.load %arg13[%c0_61, %c0_62, %c0_63] : memref<2x64x32xbf16, #tpu.memory_space<vmem>>, vector<1x64x32xbf16>
    %150 = vector.shape_cast %149 : vector<1x64x32xbf16> to vector<64x32xbf16>
    %cst_64 = arith.constant dense<0.000000e+00> : vector<8x32xf32>
    %151 = tpu.matmul %148, %150, %cst_64 {dimension_numbers = #tpu.dot_dimension_numbers<[1], [0], [0], [1], [0, 0, 1, 1], [], []>} : vector<8x64xbf16>, vector<64x32xbf16>, vector<8x32xf32> -> vector<8x32xf32>
    %c0_65 = arith.constant 0 : index
    %c0_66 = arith.constant 0 : index
    %c0_67 = arith.constant 0 : index
    %152 = vector.load %arg14[%c0_65, %c0_66, %c0_67] : memref<2x1x32xf32, #tpu.memory_space<vmem>>, vector<1x1x32xf32>
    %153 = vector.shape_cast %152 : vector<1x1x32xf32> to vector<1x32xf32>
    %154 = vector.broadcast %153 : vector<1x32xf32> to vector<8x32xf32>
    %155 = arith.addf %151, %154 : vector<8x32xf32>
    %156 = arith.addf %155, %126 : vector<8x32xf32>
    %c0_68 = arith.constant 0 : index
    %c0_69 = arith.constant 0 : index
    %c0_70 = arith.constant 0 : index
    %157 = vector.load %arg15[%c0_68, %c0_69, %c0_70] : memref<2x1x32xf32, #tpu.memory_space<vmem>>, vector<1x1x32xf32>
    %158 = vector.shape_cast %157 : vector<1x1x32xf32> to vector<1x32xf32>
    %c0_71 = arith.constant 0 : index
    %c0_72 = arith.constant 0 : index
    %c0_73 = arith.constant 0 : index
    %159 = vector.load %arg16[%c0_71, %c0_72, %c0_73] : memref<2x1x32xf32, #tpu.memory_space<vmem>>, vector<1x1x32xf32>
    %160 = vector.shape_cast %159 : vector<1x1x32xf32> to vector<1x32xf32>
    %cst_74 = arith.constant dense<0.000000e+00> : vector<8xf32>
    %161 = vector.multi_reduction <add>, %156, %cst_74 [1] : vector<8x32xf32> to vector<8xf32>
    %162 = vector.shape_cast %161 : vector<8xf32> to vector<8x1xf32>
    %cst_75 = arith.constant 3.200000e+01 : f32
    %163 = vector.broadcast %cst_75 : f32 to vector<8x1xf32>
    %164 = arith.divf %162, %163 : vector<8x1xf32>
    %165 = vector.broadcast %164 : vector<8x1xf32> to vector<8x32xf32>
    %166 = arith.subf %156, %165 : vector<8x32xf32>
    %167 = arith.mulf %166, %166 : vector<8x32xf32>
    %cst_76 = arith.constant dense<0.000000e+00> : vector<8xf32>
    %168 = vector.multi_reduction <add>, %167, %cst_76 [1] : vector<8x32xf32> to vector<8xf32>
    %169 = vector.shape_cast %168 : vector<8xf32> to vector<8x1xf32>
    %cst_77 = arith.constant 3.200000e+01 : f32
    %170 = vector.broadcast %cst_77 : f32 to vector<8x1xf32>
    %171 = arith.divf %169, %170 : vector<8x1xf32>
    %172 = vector.broadcast %164 : vector<8x1xf32> to vector<8x32xf32>
    %173 = arith.subf %156, %172 : vector<8x32xf32>
    %cst_78 = arith.constant 9.99999996E-13 : f32
    %174 = vector.broadcast %cst_78 : f32 to vector<8x1xf32>
    %175 = arith.addf %171, %174 : vector<8x1xf32>
    %176 = math.rsqrt %175 : vector<8x1xf32>
    %177 = vector.broadcast %176 : vector<8x1xf32> to vector<8x32xf32>
    %178 = arith.mulf %173, %177 : vector<8x32xf32>
    %179 = vector.broadcast %158 : vector<1x32xf32> to vector<8x32xf32>
    %180 = arith.mulf %178, %179 : vector<8x32xf32>
    %181 = vector.broadcast %160 : vector<1x32xf32> to vector<8x32xf32>
    %182 = arith.addf %180, %181 : vector<8x32xf32>
    %183 = arith.truncf %182 : vector<8x32xf32> to vector<8x32xbf16>
    %c1 = arith.constant 1 : index
    %c0_79 = arith.constant 0 : index
    %c0_80 = arith.constant 0 : index
    %184 = vector.load %arg5[%c1, %c0_79, %c0_80] : memref<2x32x96xbf16, #tpu.memory_space<vmem>>, vector<1x32x96xbf16>
    %185 = vector.shape_cast %184 : vector<1x32x96xbf16> to vector<32x96xbf16>
    %cst_81 = arith.constant dense<0.000000e+00> : vector<8x96xf32>
    %186 = tpu.matmul %183, %185, %cst_81 {dimension_numbers = #tpu.dot_dimension_numbers<[1], [0], [0], [1], [0, 0, 1, 1], [], []>} : vector<8x32xbf16>, vector<32x96xbf16>, vector<8x96xf32> -> vector<8x96xf32>
    %c1_82 = arith.constant 1 : index
    %c0_83 = arith.constant 0 : index
    %c0_84 = arith.constant 0 : index
    %187 = vector.load %arg6[%c1_82, %c0_83, %c0_84] : memref<2x1x96xf32, #tpu.memory_space<vmem>>, vector<1x1x96xf32>
    %188 = vector.shape_cast %187 : vector<1x1x96xf32> to vector<1x96xf32>
    %189 = vector.broadcast %188 : vector<1x96xf32> to vector<8x96xf32>
    %190 = arith.addf %186, %189 : vector<8x96xf32>
    %191 = vector.extract_strided_slice %190 {offsets = [0, 0], sizes = [8, 32], strides = [1, 1]} : vector<8x96xf32> to vector<8x32xf32>
    %192 = vector.extract_strided_slice %190 {offsets = [0, 32], sizes = [8, 32], strides = [1, 1]} : vector<8x96xf32> to vector<8x32xf32>
    %193 = vector.extract_strided_slice %190 {offsets = [0, 64], sizes = [8, 32], strides = [1, 1]} : vector<8x96xf32> to vector<8x32xf32>
    %c1_85 = arith.constant 1 : index
    %c0_86 = arith.constant 0 : index
    %c0_87 = arith.constant 0 : index
    %194 = vector.load %arg7[%c1_85, %c0_86, %c0_87] : memref<2x32x32xbf16, #tpu.memory_space<vmem>>, vector<1x32x32xbf16>
    %195 = vector.shape_cast %194 : vector<1x32x32xbf16> to vector<32x32xbf16>
    %cst_88 = arith.constant 0.000000e+00 : f32
    %196 = vector.broadcast %cst_88 : f32 to vector<8x32xf32>
    %197 = vector.extract_strided_slice %191 {offsets = [0, 0], sizes = [8, 16], strides = [1, 1]} : vector<8x32xf32> to vector<8x16xf32>
    %198 = arith.truncf %197 : vector<8x16xf32> to vector<8x16xbf16>
    %199 = vector.extract_strided_slice %192 {offsets = [0, 0], sizes = [8, 16], strides = [1, 1]} : vector<8x32xf32> to vector<8x16xf32>
    %200 = arith.truncf %199 : vector<8x16xf32> to vector<8x16xbf16>
    %cst_89 = arith.constant dense<0.000000e+00> : vector<8x8xf32>
    %201 = tpu.matmul %198, %200, %cst_89 {dimension_numbers = #tpu.dot_dimension_numbers<[1], [1], [0], [0], [0, 0, 1, 0], [], []>} : vector<8x16xbf16>, vector<8x16xbf16>, vector<8x8xf32> -> vector<8x8xf32>
    %cst_90 = arith.constant 2.500000e-01 : f32
    %202 = vector.broadcast %cst_90 : f32 to vector<8x8xf32>
    %203 = arith.mulf %201, %202 : vector<8x8xf32>
    %204 = vector.broadcast %27 : vector<1x8xf32> to vector<8x8xf32>
    %205 = arith.addf %203, %204 : vector<8x8xf32>
    %cst_91 = arith.constant dense<0xFF800000> : vector<8xf32>
    %206 = vector.multi_reduction <maximumf>, %205, %cst_91 [1] : vector<8x8xf32> to vector<8xf32>
    %207 = vector.shape_cast %206 : vector<8xf32> to vector<8x1xf32>
    %208 = vector.broadcast %207 : vector<8x1xf32> to vector<8x8xf32>
    %209 = arith.subf %205, %208 : vector<8x8xf32>
    %210 = math.exp %209 : vector<8x8xf32>
    %cst_92 = arith.constant dense<0.000000e+00> : vector<8xf32>
    %211 = vector.multi_reduction <add>, %210, %cst_92 [1] : vector<8x8xf32> to vector<8xf32>
    %212 = vector.shape_cast %211 : vector<8xf32> to vector<8x1xf32>
    %213 = tpu.reciprocal %212 {approx = true} : vector<8x1xf32> -> vector<8x1xf32>
    %214 = vector.broadcast %213 : vector<8x1xf32> to vector<8x8xf32>
    %215 = arith.mulf %210, %214 : vector<8x8xf32>
    %216 = arith.truncf %215 : vector<8x8xf32> to vector<8x8xbf16>
    %217 = vector.extract_strided_slice %193 {offsets = [0, 0], sizes = [8, 16], strides = [1, 1]} : vector<8x32xf32> to vector<8x16xf32>
    %218 = arith.truncf %217 : vector<8x16xf32> to vector<8x16xbf16>
    %cst_93 = arith.constant dense<0.000000e+00> : vector<8x16xf32>
    %219 = tpu.matmul %216, %218, %cst_93 {dimension_numbers = #tpu.dot_dimension_numbers<[1], [0], [0], [1], [0, 0, 1, 1], [], []>} : vector<8x8xbf16>, vector<8x16xbf16>, vector<8x16xf32> -> vector<8x16xf32>
    %220 = arith.truncf %219 : vector<8x16xf32> to vector<8x16xbf16>
    %221 = vector.extract_strided_slice %195 {offsets = [0, 0], sizes = [16, 32], strides = [1, 1]} : vector<32x32xbf16> to vector<16x32xbf16>
    %cst_94 = arith.constant dense<0.000000e+00> : vector<8x32xf32>
    %222 = tpu.matmul %220, %221, %cst_94 {dimension_numbers = #tpu.dot_dimension_numbers<[1], [0], [0], [1], [0, 0, 1, 1], [], []>} : vector<8x16xbf16>, vector<16x32xbf16>, vector<8x32xf32> -> vector<8x32xf32>
    %223 = arith.addf %196, %222 : vector<8x32xf32>
    %224 = vector.extract_strided_slice %191 {offsets = [0, 16], sizes = [8, 16], strides = [1, 1]} : vector<8x32xf32> to vector<8x16xf32>
    %225 = arith.truncf %224 : vector<8x16xf32> to vector<8x16xbf16>
    %226 = vector.extract_strided_slice %192 {offsets = [0, 16], sizes = [8, 16], strides = [1, 1]} : vector<8x32xf32> to vector<8x16xf32>
    %227 = arith.truncf %226 : vector<8x16xf32> to vector<8x16xbf16>
    %cst_95 = arith.constant dense<0.000000e+00> : vector<8x8xf32>
    %228 = tpu.matmul %225, %227, %cst_95 {dimension_numbers = #tpu.dot_dimension_numbers<[1], [1], [0], [0], [0, 0, 1, 0], [], []>} : vector<8x16xbf16>, vector<8x16xbf16>, vector<8x8xf32> -> vector<8x8xf32>
    %cst_96 = arith.constant 2.500000e-01 : f32
    %229 = vector.broadcast %cst_96 : f32 to vector<8x8xf32>
    %230 = arith.mulf %228, %229 : vector<8x8xf32>
    %231 = vector.broadcast %27 : vector<1x8xf32> to vector<8x8xf32>
    %232 = arith.addf %230, %231 : vector<8x8xf32>
    %cst_97 = arith.constant dense<0xFF800000> : vector<8xf32>
    %233 = vector.multi_reduction <maximumf>, %232, %cst_97 [1] : vector<8x8xf32> to vector<8xf32>
    %234 = vector.shape_cast %233 : vector<8xf32> to vector<8x1xf32>
    %235 = vector.broadcast %234 : vector<8x1xf32> to vector<8x8xf32>
    %236 = arith.subf %232, %235 : vector<8x8xf32>
    %237 = math.exp %236 : vector<8x8xf32>
    %cst_98 = arith.constant dense<0.000000e+00> : vector<8xf32>
    %238 = vector.multi_reduction <add>, %237, %cst_98 [1] : vector<8x8xf32> to vector<8xf32>
    %239 = vector.shape_cast %238 : vector<8xf32> to vector<8x1xf32>
    %240 = tpu.reciprocal %239 {approx = true} : vector<8x1xf32> -> vector<8x1xf32>
    %241 = vector.broadcast %240 : vector<8x1xf32> to vector<8x8xf32>
    %242 = arith.mulf %237, %241 : vector<8x8xf32>
    %243 = arith.truncf %242 : vector<8x8xf32> to vector<8x8xbf16>
    %244 = vector.extract_strided_slice %193 {offsets = [0, 16], sizes = [8, 16], strides = [1, 1]} : vector<8x32xf32> to vector<8x16xf32>
    %245 = arith.truncf %244 : vector<8x16xf32> to vector<8x16xbf16>
    %cst_99 = arith.constant dense<0.000000e+00> : vector<8x16xf32>
    %246 = tpu.matmul %243, %245, %cst_99 {dimension_numbers = #tpu.dot_dimension_numbers<[1], [0], [0], [1], [0, 0, 1, 1], [], []>} : vector<8x8xbf16>, vector<8x16xbf16>, vector<8x16xf32> -> vector<8x16xf32>
    %247 = arith.truncf %246 : vector<8x16xf32> to vector<8x16xbf16>
    %248 = vector.extract_strided_slice %195 {offsets = [16, 0], sizes = [16, 32], strides = [1, 1]} : vector<32x32xbf16> to vector<16x32xbf16>
    %cst_100 = arith.constant dense<0.000000e+00> : vector<8x32xf32>
    %249 = tpu.matmul %247, %248, %cst_100 {dimension_numbers = #tpu.dot_dimension_numbers<[1], [0], [0], [1], [0, 0, 1, 1], [], []>} : vector<8x16xbf16>, vector<16x32xbf16>, vector<8x32xf32> -> vector<8x32xf32>
    %250 = arith.addf %223, %249 : vector<8x32xf32>
    %c1_101 = arith.constant 1 : index
    %c0_102 = arith.constant 0 : index
    %c0_103 = arith.constant 0 : index
    %251 = vector.load %arg8[%c1_101, %c0_102, %c0_103] : memref<2x1x32xf32, #tpu.memory_space<vmem>>, vector<1x1x32xf32>
    %252 = vector.shape_cast %251 : vector<1x1x32xf32> to vector<1x32xf32>
    %253 = vector.broadcast %252 : vector<1x32xf32> to vector<8x32xf32>
    %254 = arith.addf %250, %253 : vector<8x32xf32>
    %255 = arith.addf %254, %182 : vector<8x32xf32>
    %c1_104 = arith.constant 1 : index
    %c0_105 = arith.constant 0 : index
    %c0_106 = arith.constant 0 : index
    %256 = vector.load %arg9[%c1_104, %c0_105, %c0_106] : memref<2x1x32xf32, #tpu.memory_space<vmem>>, vector<1x1x32xf32>
    %257 = vector.shape_cast %256 : vector<1x1x32xf32> to vector<1x32xf32>
    %c1_107 = arith.constant 1 : index
    %c0_108 = arith.constant 0 : index
    %c0_109 = arith.constant 0 : index
    %258 = vector.load %arg10[%c1_107, %c0_108, %c0_109] : memref<2x1x32xf32, #tpu.memory_space<vmem>>, vector<1x1x32xf32>
    %259 = vector.shape_cast %258 : vector<1x1x32xf32> to vector<1x32xf32>
    %cst_110 = arith.constant dense<0.000000e+00> : vector<8xf32>
    %260 = vector.multi_reduction <add>, %255, %cst_110 [1] : vector<8x32xf32> to vector<8xf32>
    %261 = vector.shape_cast %260 : vector<8xf32> to vector<8x1xf32>
    %cst_111 = arith.constant 3.200000e+01 : f32
    %262 = vector.broadcast %cst_111 : f32 to vector<8x1xf32>
    %263 = arith.divf %261, %262 : vector<8x1xf32>
    %264 = vector.broadcast %263 : vector<8x1xf32> to vector<8x32xf32>
    %265 = arith.subf %255, %264 : vector<8x32xf32>
    %266 = arith.mulf %265, %265 : vector<8x32xf32>
    %cst_112 = arith.constant dense<0.000000e+00> : vector<8xf32>
    %267 = vector.multi_reduction <add>, %266, %cst_112 [1] : vector<8x32xf32> to vector<8xf32>
    %268 = vector.shape_cast %267 : vector<8xf32> to vector<8x1xf32>
    %cst_113 = arith.constant 3.200000e+01 : f32
    %269 = vector.broadcast %cst_113 : f32 to vector<8x1xf32>
    %270 = arith.divf %268, %269 : vector<8x1xf32>
    %271 = vector.broadcast %263 : vector<8x1xf32> to vector<8x32xf32>
    %272 = arith.subf %255, %271 : vector<8x32xf32>
    %cst_114 = arith.constant 9.99999996E-13 : f32
    %273 = vector.broadcast %cst_114 : f32 to vector<8x1xf32>
    %274 = arith.addf %270, %273 : vector<8x1xf32>
    %275 = math.rsqrt %274 : vector<8x1xf32>
    %276 = vector.broadcast %275 : vector<8x1xf32> to vector<8x32xf32>
    %277 = arith.mulf %272, %276 : vector<8x32xf32>
    %278 = vector.broadcast %257 : vector<1x32xf32> to vector<8x32xf32>
    %279 = arith.mulf %277, %278 : vector<8x32xf32>
    %280 = vector.broadcast %259 : vector<1x32xf32> to vector<8x32xf32>
    %281 = arith.addf %279, %280 : vector<8x32xf32>
    %282 = arith.truncf %281 : vector<8x32xf32> to vector<8x32xbf16>
    %c1_115 = arith.constant 1 : index
    %c0_116 = arith.constant 0 : index
    %c0_117 = arith.constant 0 : index
    %283 = vector.load %arg11[%c1_115, %c0_116, %c0_117] : memref<2x32x64xbf16, #tpu.memory_space<vmem>>, vector<1x32x64xbf16>
    %284 = vector.shape_cast %283 : vector<1x32x64xbf16> to vector<32x64xbf16>
    %cst_118 = arith.constant dense<0.000000e+00> : vector<8x64xf32>
    %285 = tpu.matmul %282, %284, %cst_118 {dimension_numbers = #tpu.dot_dimension_numbers<[1], [0], [0], [1], [0, 0, 1, 1], [], []>} : vector<8x32xbf16>, vector<32x64xbf16>, vector<8x64xf32> -> vector<8x64xf32>
    %c1_119 = arith.constant 1 : index
    %c0_120 = arith.constant 0 : index
    %c0_121 = arith.constant 0 : index
    %286 = vector.load %arg12[%c1_119, %c0_120, %c0_121] : memref<2x1x64xf32, #tpu.memory_space<vmem>>, vector<1x1x64xf32>
    %287 = vector.shape_cast %286 : vector<1x1x64xf32> to vector<1x64xf32>
    %288 = vector.broadcast %287 : vector<1x64xf32> to vector<8x64xf32>
    %289 = arith.addf %285, %288 : vector<8x64xf32>
    %cst_122 = arith.constant 5.000000e-01 : f32
    %290 = vector.broadcast %cst_122 : f32 to vector<8x64xf32>
    %291 = arith.mulf %290, %289 : vector<8x64xf32>
    %cst_123 = arith.constant 4.471500e-02 : f32
    %292 = vector.broadcast %cst_123 : f32 to vector<8x64xf32>
    %293 = arith.mulf %292, %289 : vector<8x64xf32>
    %294 = arith.mulf %293, %289 : vector<8x64xf32>
    %295 = arith.mulf %294, %289 : vector<8x64xf32>
    %296 = arith.addf %289, %295 : vector<8x64xf32>
    %cst_124 = arith.constant 0.797884583 : f32
    %297 = vector.broadcast %cst_124 : f32 to vector<8x64xf32>
    %298 = arith.mulf %297, %296 : vector<8x64xf32>
    %299 = math.tanh %298 : vector<8x64xf32>
    %cst_125 = arith.constant 1.000000e+00 : f32
    %300 = vector.broadcast %cst_125 : f32 to vector<8x64xf32>
    %301 = arith.addf %300, %299 : vector<8x64xf32>
    %302 = arith.mulf %291, %301 : vector<8x64xf32>
    %303 = arith.truncf %302 : vector<8x64xf32> to vector<8x64xbf16>
    %c1_126 = arith.constant 1 : index
    %c0_127 = arith.constant 0 : index
    %c0_128 = arith.constant 0 : index
    %304 = vector.load %arg13[%c1_126, %c0_127, %c0_128] : memref<2x64x32xbf16, #tpu.memory_space<vmem>>, vector<1x64x32xbf16>
    %305 = vector.shape_cast %304 : vector<1x64x32xbf16> to vector<64x32xbf16>
    %cst_129 = arith.constant dense<0.000000e+00> : vector<8x32xf32>
    %306 = tpu.matmul %303, %305, %cst_129 {dimension_numbers = #tpu.dot_dimension_numbers<[1], [0], [0], [1], [0, 0, 1, 1], [], []>} : vector<8x64xbf16>, vector<64x32xbf16>, vector<8x32xf32> -> vector<8x32xf32>
    %c1_130 = arith.constant 1 : index
    %c0_131 = arith.constant 0 : index
    %c0_132 = arith.constant 0 : index
    %307 = vector.load %arg14[%c1_130, %c0_131, %c0_132] : memref<2x1x32xf32, #tpu.memory_space<vmem>>, vector<1x1x32xf32>
    %308 = vector.shape_cast %307 : vector<1x1x32xf32> to vector<1x32xf32>
    %309 = vector.broadcast %308 : vector<1x32xf32> to vector<8x32xf32>
    %310 = arith.addf %306, %309 : vector<8x32xf32>
    %311 = arith.addf %310, %281 : vector<8x32xf32>
    %c1_133 = arith.constant 1 : index
    %c0_134 = arith.constant 0 : index
    %c0_135 = arith.constant 0 : index
    %312 = vector.load %arg15[%c1_133, %c0_134, %c0_135] : memref<2x1x32xf32, #tpu.memory_space<vmem>>, vector<1x1x32xf32>
    %313 = vector.shape_cast %312 : vector<1x1x32xf32> to vector<1x32xf32>
    %c1_136 = arith.constant 1 : index
    %c0_137 = arith.constant 0 : index
    %c0_138 = arith.constant 0 : index
    %314 = vector.load %arg16[%c1_136, %c0_137, %c0_138] : memref<2x1x32xf32, #tpu.memory_space<vmem>>, vector<1x1x32xf32>
    %315 = vector.shape_cast %314 : vector<1x1x32xf32> to vector<1x32xf32>
    %cst_139 = arith.constant dense<0.000000e+00> : vector<8xf32>
    %316 = vector.multi_reduction <add>, %311, %cst_139 [1] : vector<8x32xf32> to vector<8xf32>
    %317 = vector.shape_cast %316 : vector<8xf32> to vector<8x1xf32>
    %cst_140 = arith.constant 3.200000e+01 : f32
    %318 = vector.broadcast %cst_140 : f32 to vector<8x1xf32>
    %319 = arith.divf %317, %318 : vector<8x1xf32>
    %320 = vector.broadcast %319 : vector<8x1xf32> to vector<8x32xf32>
    %321 = arith.subf %311, %320 : vector<8x32xf32>
    %322 = arith.mulf %321, %321 : vector<8x32xf32>
    %cst_141 = arith.constant dense<0.000000e+00> : vector<8xf32>
    %323 = vector.multi_reduction <add>, %322, %cst_141 [1] : vector<8x32xf32> to vector<8xf32>
    %324 = vector.shape_cast %323 : vector<8xf32> to vector<8x1xf32>
    %cst_142 = arith.constant 3.200000e+01 : f32
    %325 = vector.broadcast %cst_142 : f32 to vector<8x1xf32>
    %326 = arith.divf %324, %325 : vector<8x1xf32>
    %327 = vector.broadcast %319 : vector<8x1xf32> to vector<8x32xf32>
    %328 = arith.subf %311, %327 : vector<8x32xf32>
    %cst_143 = arith.constant 9.99999996E-13 : f32
    %329 = vector.broadcast %cst_143 : f32 to vector<8x1xf32>
    %330 = arith.addf %326, %329 : vector<8x1xf32>
    %331 = math.rsqrt %330 : vector<8x1xf32>
    %332 = vector.broadcast %331 : vector<8x1xf32> to vector<8x32xf32>
    %333 = arith.mulf %328, %332 : vector<8x32xf32>
    %334 = vector.broadcast %313 : vector<1x32xf32> to vector<8x32xf32>
    %335 = arith.mulf %333, %334 : vector<8x32xf32>
    %336 = vector.broadcast %315 : vector<1x32xf32> to vector<8x32xf32>
    %337 = arith.addf %335, %336 : vector<8x32xf32>
    %338 = vector.extract_strided_slice %337 {offsets = [0, 0], sizes = [1, 32], strides = [1, 1]} : vector<8x32xf32> to vector<1x32xf32>
    %339 = arith.truncf %338 : vector<1x32xf32> to vector<1x32xbf16>
    %c0_144 = arith.constant 0 : index
    %c0_145 = arith.constant 0 : index
    %340 = vector.load %arg17[%c0_144, %c0_145] : memref<32x32xbf16, #tpu.memory_space<vmem>>, vector<32x32xbf16>
    %cst_146 = arith.constant dense<0.000000e+00> : vector<1x32xf32>
    %341 = tpu.matmul %339, %340, %cst_146 {dimension_numbers = #tpu.dot_dimension_numbers<[1], [0], [0], [1], [0, 0, 1, 1], [], []>} : vector<1x32xbf16>, vector<32x32xbf16>, vector<1x32xf32> -> vector<1x32xf32>
    %c0_147 = arith.constant 0 : index
    %c0_148 = arith.constant 0 : index
    %342 = vector.load %arg18[%c0_147, %c0_148] : memref<1x32xf32, #tpu.memory_space<vmem>>, vector<1x32xf32>
    %343 = arith.addf %341, %342 : vector<1x32xf32>
    %344 = math.tanh %343 : vector<1x32xf32>
    %c0_149 = arith.constant 0 : index
    %c0_150 = arith.constant 0 : index
    %345 = vector.load %arg19[%c0_149, %c0_150] : memref<32x1xf32, #tpu.memory_space<vmem>>, vector<32x1xf32>
    %cst_151 = arith.constant dense<0.000000e+00> : vector<1x1xf32>
    %346 = tpu.matmul %344, %345, %cst_151 {dimension_numbers = #tpu.dot_dimension_numbers<[1], [0], [0], [1], [0, 0, 1, 1], [], []>} : vector<1x32xf32>, vector<32x1xf32>, vector<1x1xf32> -> vector<1x1xf32>
    %c0_152 = arith.constant 0 : index
    %c0_153 = arith.constant 0 : index
    %347 = vector.load %arg20[%c0_152, %c0_153] : memref<1x1xf32, #tpu.memory_space<vmem>>, vector<1x1xf32>
    %348 = arith.addf %346, %347 : vector<1x1xf32>
    %349 = arith.negf %348 : vector<1x1xf32>
    %350 = math.exp %349 : vector<1x1xf32>
    %cst_154 = arith.constant 1.000000e+00 : f32
    %351 = vector.broadcast %cst_154 : f32 to vector<1x1xf32>
    %352 = arith.addf %351, %350 : vector<1x1xf32>
    %353 = arith.divf %351, %352 : vector<1x1xf32>
    %354 = vector.shape_cast %353 : vector<1x1xf32> to vector<1x1x1xf32>
    %c0_155 = arith.constant 0 : index
    %c0_156 = arith.constant 0 : index
    %c0_157 = arith.constant 0 : index
    %355 = vector.load %arg21[%c0_155, %c0_156, %c0_157] : memref<1x1x1xf32, #tpu.memory_space<vmem>>, vector<1x1x1xf32>
    tpu.vector_store %arg21[%c0_155, %c0_156, %c0_157], %354 {strides = array<i32>} : memref<1x1x1xf32, #tpu.memory_space<vmem>>, vector<1x1x1xf32>,
    return
  }
  func.func @transform_0(%arg0: i32) -> (i32, i32, i32) {
    %c0_i32 = arith.constant 0 : i32
    %c0_i32_0 = arith.constant 0 : i32
    %c0_i32_1 = arith.constant 0 : i32
    return %arg0, %c0_i32, %c0_i32_0 : i32, i32, i32
  }
  func.func @transform_1(%arg0: i32) -> (i32, i32, i32) {
    %c0_i32 = arith.constant 0 : i32
    %c0_i32_0 = arith.constant 0 : i32
    %c0_i32_1 = arith.constant 0 : i32
    return %arg0, %c0_i32, %c0_i32_0 : i32, i32, i32
  }
  func.func @transform_2(%arg0: i32) -> (i32, i32) {
    %c0_i32 = arith.constant 0 : i32
    %c0_i32_0 = arith.constant 0 : i32
    %c0_i32_1 = arith.constant 0 : i32
    return %c0_i32, %c0_i32_0 : i32, i32
  }
  func.func @transform_3(%arg0: i32) -> (i32, i32) {
    %c0_i32 = arith.constant 0 : i32
    %c0_i32_0 = arith.constant 0 : i32
    %c0_i32_1 = arith.constant 0 : i32
    return %c0_i32, %c0_i32_0 : i32, i32
  }
  func.func @transform_4(%arg0: i32) -> (i32, i32, i32) {
    %c0_i32 = arith.constant 0 : i32
    %c0_i32_0 = arith.constant 0 : i32
    %c0_i32_1 = arith.constant 0 : i32
    %c0_i32_2 = arith.constant 0 : i32
    return %c0_i32, %c0_i32_0, %c0_i32_1 : i32, i32, i32
  }
  func.func @transform_5(%arg0: i32) -> (i32, i32, i32) {
    %c0_i32 = arith.constant 0 : i32
    %c0_i32_0 = arith.constant 0 : i32
    %c0_i32_1 = arith.constant 0 : i32
    %c0_i32_2 = arith.constant 0 : i32
    return %c0_i32, %c0_i32_0, %c0_i32_1 : i32, i32, i32
  }
  func.func @transform_6(%arg0: i32) -> (i32, i32, i32) {
    %c0_i32 = arith.constant 0 : i32
    %c0_i32_0 = arith.constant 0 : i32
    %c0_i32_1 = arith.constant 0 : i32
    %c0_i32_2 = arith.constant 0 : i32
    return %c0_i32, %c0_i32_0, %c0_i32_1 : i32, i32, i32
  }
  func.func @transform_7(%arg0: i32) -> (i32, i32, i32) {
    %c0_i32 = arith.constant 0 : i32
    %c0_i32_0 = arith.constant 0 : i32
    %c0_i32_1 = arith.constant 0 : i32
    %c0_i32_2 = arith.constant 0 : i32
    return %c0_i32, %c0_i32_0, %c0_i32_1 : i32, i32, i32
  }
  func.func @transform_8(%arg0: i32) -> (i32, i32, i32) {
    %c0_i32 = arith.constant 0 : i32
    %c0_i32_0 = arith.constant 0 : i32
    %c0_i32_1 = arith.constant 0 : i32
    %c0_i32_2 = arith.constant 0 : i32
    return %c0_i32, %c0_i32_0, %c0_i32_1 : i32, i32, i32
  }
  func.func @transform_9(%arg0: i32) -> (i32, i32, i32) {
    %c0_i32 = arith.constant 0 : i32
    %c0_i32_0 = arith.constant 0 : i32
    %c0_i32_1 = arith.constant 0 : i32
    %c0_i32_2 = arith.constant 0 : i32
    return %c0_i32, %c0_i32_0, %c0_i32_1 : i32, i32, i32
  }
  func.func @transform_10(%arg0: i32) -> (i32, i32, i32) {
    %c0_i32 = arith.constant 0 : i32
    %c0_i32_0 = arith.constant 0 : i32
    %c0_i32_1 = arith.constant 0 : i32
    %c0_i32_2 = arith.constant 0 : i32
    return %c0_i32, %c0_i32_0, %c0_i32_1 : i32, i32, i32
  }
  func.func @transform_11(%arg0: i32) -> (i32, i32, i32) {
    %c0_i32 = arith.constant 0 : i32
    %c0_i32_0 = arith.constant 0 : i32
    %c0_i32_1 = arith.constant 0 : i32
    %c0_i32_2 = arith.constant 0 : i32
    return %c0_i32, %c0_i32_0, %c0_i32_1 : i32, i32, i32
  }
  func.func @transform_12(%arg0: i32) -> (i32, i32, i32) {
    %c0_i32 = arith.constant 0 : i32
    %c0_i32_0 = arith.constant 0 : i32
    %c0_i32_1 = arith.constant 0 : i32
    %c0_i32_2 = arith.constant 0 : i32
    return %c0_i32, %c0_i32_0, %c0_i32_1 : i32, i32, i32
  }
  func.func @transform_13(%arg0: i32) -> (i32, i32, i32) {
    %c0_i32 = arith.constant 0 : i32
    %c0_i32_0 = arith.constant 0 : i32
    %c0_i32_1 = arith.constant 0 : i32
    %c0_i32_2 = arith.constant 0 : i32
    return %c0_i32, %c0_i32_0, %c0_i32_1 : i32, i32, i32
  }
  func.func @transform_14(%arg0: i32) -> (i32, i32, i32) {
    %c0_i32 = arith.constant 0 : i32
    %c0_i32_0 = arith.constant 0 : i32
    %c0_i32_1 = arith.constant 0 : i32
    %c0_i32_2 = arith.constant 0 : i32
    return %c0_i32, %c0_i32_0, %c0_i32_1 : i32, i32, i32
  }
  func.func @transform_15(%arg0: i32) -> (i32, i32, i32) {
    %c0_i32 = arith.constant 0 : i32
    %c0_i32_0 = arith.constant 0 : i32
    %c0_i32_1 = arith.constant 0 : i32
    %c0_i32_2 = arith.constant 0 : i32
    return %c0_i32, %c0_i32_0, %c0_i32_1 : i32, i32, i32
  }
  func.func @transform_16(%arg0: i32) -> (i32, i32) {
    %c0_i32 = arith.constant 0 : i32
    %c0_i32_0 = arith.constant 0 : i32
    %c0_i32_1 = arith.constant 0 : i32
    return %c0_i32, %c0_i32_0 : i32, i32
  }
  func.func @transform_17(%arg0: i32) -> (i32, i32) {
    %c0_i32 = arith.constant 0 : i32
    %c0_i32_0 = arith.constant 0 : i32
    %c0_i32_1 = arith.constant 0 : i32
    return %c0_i32, %c0_i32_0 : i32, i32
  }
  func.func @transform_18(%arg0: i32) -> (i32, i32) {
    %c0_i32 = arith.constant 0 : i32
    %c0_i32_0 = arith.constant 0 : i32
    %c0_i32_1 = arith.constant 0 : i32
    return %c0_i32, %c0_i32_0 : i32, i32
  }
  func.func @transform_19(%arg0: i32) -> (i32, i32) {
    %c0_i32 = arith.constant 0 : i32
    %c0_i32_0 = arith.constant 0 : i32
    %c0_i32_1 = arith.constant 0 : i32
    return %c0_i32, %c0_i32_0 : i32, i32
  }
  func.func @transform_20(%arg0: i32) -> (i32, i32, i32) {
    %c0_i32 = arith.constant 0 : i32
    %c0_i32_0 = arith.constant 0 : i32
    %c0_i32_1 = arith.constant 0 : i32
    return %arg0, %c0_i32, %c0_i32_0 : i32, i32, i32
  }
}

</mosaic_0001>

<bundles_post_ra>
// kernel: bert_classifier_forward.1
= control target key start
LH: loop header
LB: loop body
LE: loop exit
PB: predicated region body
PF: predicated region fallthrough
CT: control target
= control target key end

     0   :  { %s1947_s23 = smov 0   ;;  %s2196_s0 = inlined_call_operand.vmem [shape: f32[2,8,32], index: 0, kind: input, shape index: {}]   ;;  %s2197_s1 = inlined_call_operand.vmem [shape: f32[2,1,8], index: 1, kind: input, shape index: {}]   ;;  %s2198_s2 = inlined_call_operand.vmem [shape: f32[1,32], index: 2, kind: input, shape index: {}]   ;;  %s2199_s3 = inlined_call_operand.vmem [shape: f32[1,32], index: 3, kind: input, shape index: {}]   ;;  %s2200_s4 = inlined_call_operand.vmem [shape: bf16[2,32,96], index: 4, kind: input, shape index: {}]   ;;  %s2201_s5 = inlined_call_operand.vmem [shape: f32[2,1,96], index: 5, kind: input, shape index: {}]   ;;  %s2202_s6 = inlined_call_operand.vmem [shape: bf16[2,32,32], index: 6, kind: input, shape index: {}]   ;;  %s2203_s7 = inlined_call_operand.vmem [shape: f32[2,1,32], index: 7, kind: input, shape index: {}]   ;;  %s2204_s8 = inlined_call_operand.vmem [shape: f32[2,1,32], index: 8, kind: input, shape index: {}]   ;;  %s2205_s9 = inlined_call_operand.vmem [shape: f32[2,1,32], index: 9, kind: input, shape index: {}]   ;;  %s2206_s10 = inlined_call_operand.vmem [shape: bf16[2,32,64], index: 10, kind: input, shape index: {}]   ;;  %s2207_s11 = inlined_call_operand.vmem [shape: f32[2,1,64], index: 11, kind: input, shape index: {}]   ;;  %s2208_s12 = inlined_call_operand.vmem [shape: bf16[2,64,32], index: 12, kind: input, shape index: {}]   ;;  %s2209_s13 = inlined_call_operand.vmem [shape: f32[2,1,32], index: 13, kind: input, shape index: {}]   ;;  %s2210_s14 = inlined_call_operand.vmem [shape: f32[2,1,32], index: 14, kind: input, shape index: {}]   ;;  %s2211_s15 = inlined_call_operand.vmem [shape: f32[2,1,32], index: 15, kind: input, shape index: {}]   ;;  %s2212_s16 = inlined_call_operand.vmem [shape: bf16[32,32], index: 16, kind: input, shape index: {}]   ;;  %s2213_s17 = inlined_call_operand.vmem [shape: f32[1,32], index: 17, kind: input, shape index: {}]   ;;  %s2214_s18 = inlined_call_operand.vmem [shape: f32[32,1], index: 18, kind: input, shape index: {}]   ;;  %s2215_s19 = inlined_call_operand.<no memory space> [shape: f32[1,1], index: 19, kind: input, shape index: {}]   ;;  %s2216_s20 = inlined_call_operand.vmem [shape: f32[2,1,1], index: 20, kind: output, shape index: {}]  }
   0x1   :  { %2222 = sst [smem:[#allocation3_spill]] %s2196_s0  ;;  %v25_v0 = vstv %s2215_s19 }
   0x2   :  { %2223 = sst [smem:[#allocation4_spill]] %s2197_s1  ;;  %26 = vst [vmem:[#allocation2] sm:$0x1] %v25_v0 }
   0x3   :  { %2224 = sst [smem:[#allocation5_spill]] %s2198_s2 }
   0x4   :  { %2225 = sst [smem:[#allocation6_spill]] %s2199_s3 }
   0x5   :  { %2226 = sst [smem:[#allocation7_spill]] %s2200_s4 }
   0x6 LB: > { %s1587_s24 = sadd.s32 4294967295, %s1831_s23   ;;  %p1591_p0 = scmp.ge.s32.totalorder %s1831_s23, 1  ;;  %s1831_s23 = sphi %s1947_s23, %s32_s23  }
   0x7   : > { %p571_p1 = scmp.lt.s32.totalorder %s1831_s23, 3 }
   0x9   : > { %p572_p2 = pnand %p1591_p0, %p571_p1 }
   0xa   : > { %p629_p3 = scmp.lt.s32.totalorder (!%p572_p2), %s1587_s24, 1  ;;  %s2227_s3 = sld [smem:[#allocation4_spill]] (!%p572_p2) }
   0xb   : > { %575 = sbr.rel (%p572_p2) target bundleno = 4133 (0x1025), region = 100  ;;  %s2228_s4 = sld [smem:[#allocation3_spill]] (!%p572_p2) }
   0xc   : > { %s2229_s21 = sld [smem:[#allocation7_spill]] (!%p572_p2)  ;;  %s2221_s0 = smov (!%p572_p2), 112  }
   0xd   : > { %s2230_s25 = sld [smem:[#allocation5_spill]] (!%p572_p2)  ;;  %s1835_s1 = smov (!%p572_p2), 96  }
   0xe   : > { %s1836_s22 = smov (!%p572_p2), 80  }
  0x10   : > { %s2236_s24 = smov (!%p629_p3, %s1587_s24), 1  ;;  %vm643_vm0 = vcmask 261120   ;;  %v1833_v3 = vmov 32.0   ;;  %v1770_v33 = vld [vmem:[%s2201_s5] ss:$0 sm:$0xff]  ;;  %vm727_vm5 = vcmask 130048  }
  0x11   : > { %s1592_s19 = sshll.u32 %s2236_s24, 3  ;;  %s635_s26 = scalar_lea.vmem %s2227_s3, %s2236_s24  ;;  %1787 = vrcp.f32 %v1833_v3  ;;  %vm752_vm6 = vcmask 64512   ;;  %vm770_vm7 = vcmask 1043456   ;;  %vm1012_vm11 = vcmask 523264  }
  0x12   : > { %s632_s29 = scalar_lea.vmem %s2228_s4, %s1592_s19  ;;  %v1733_v15 = vld [vmem:[%s2229_s21 + $0x8] sm:$0xff]  ;;  %v1732_v16 = vld [vmem:[%s2229_s21] sm:$0xff]  ;;  %s2231_s4 = sld [smem:[#allocation6_spill]] }
  0x13   : > { %v640_v1 = vld [vmem:[%s632_s29] sm:$0xff]  ;;  %712 = vmatpush.bf16.msra.mxu0 %v1733_v15 }
  0x14   : > { %v644_v2 = vsel %vm643_vm0, %v640_v1, 0.0  ;;  %v1768_v26 = vld [vmem:[%s2230_s25] ss:$0 sm:$0xff]  ;;  %s2220_s25 = smov 48  }
  0x15   : > { %645 = vadd.xlane.f32.xlu0 %v644_v2  ;;  %v2003_v43 = vld [vmem:[%s635_s26] ss:$0 sm:$0xff]  ;;  %s2219_s26 = smov 64  }
  0x17   : > { %v1788_v4 = vpop.eup %1787  ;;  %713 = vmatpush.bf16.msra.mxu0 %v1732_v16 }
  0x18   : > { %v648_v5 = vmul.f32 32.0, %v1788_v4  ;;  %vm652_vm1 = vweird.f32 %v1788_v4  ;;  %v1769_v29 = vld [vmem:[%s2231_s4] ss:$0 sm:$0xff] }
  0x1a   : > { %v649_v6 = vsub.f32 1.0, %v648_v5 }
  0x1c   : > { %v650_v7 = vmul.f32 %v1788_v4, %v649_v6 }
  0x1e   : > { %v651_v8 = vadd.f32 %v1788_v4, %v650_v7 }
  0x20   : > { %v1966_v9 = vsel %vm652_vm1, %v1788_v4, %v651_v8 }
  0x88   : > { %v646_v10 = vpop.xlane.xlu0 %645 }
  0x89   : > { %v654_v11 = vmul.f32 %v1966_v9, %v646_v10 }
  0x8b   : > { %v655_v12 = vsub.f32 %v640_v1, %v654_v11 }
  0x8d   : > { %v656_v13 = vmul.f32 %v655_v12, %v655_v12 }
  0x8f   : > { %v657_v14 = vsel %vm643_vm0, %v656_v13, 0.0  ;;  %v1734_v13 = vld [vmem:[%s2202_s6] sm:$0xff] }
  0x90   : > { %658 = vadd.xlane.f32.xlu0 %v657_v14  ;;  %v1735_v14 = vld [vmem:[%s2202_s6 + $0x8] sm:$0xff] }
  0x91   : > { %863 = vmatpush.bf16.msrb.mxu0 %v1735_v14 }
 0x103   : > { %v659_v17 = vpop.xlane.xlu0 %658 }
 0x104   : > { %v660_v18 = vmul.f32 %v659_v17, %v1966_v9 }
 0x106   : > { %v661_v19 = vadd.f32 1e-12, %v660_v18 }
 0x108   : > { %1789 = vrsqrt.f32 %v661_v19  ;;  %vm668_vm3 = vweird.f32 %v661_v19 }
 0x10e   : > { %v1790_v20 = vpop.eup %1789 }
 0x10f   : > { %v663_v21 = vmul.f32 %v1790_v20, %v661_v19  ;;  %vm669_vm2 = vweird.f32 %v1790_v20 }
 0x110   : > { %vm670_vm4 = vmor %vm668_vm3, %vm669_vm2 }
 0x111   : > { %v664_v22 = vmul.f32 %v1790_v20, %v663_v21 }
 0x113   : > { %v665_v23 = vmul.f32 0.5, %v664_v22 }
 0x115   : > { %v666_v24 = vsub.f32 1.5, %v665_v23  ;;  %v1772_v23 = vld [vmem:[%s2203_s7] ss:$0 sm:$0xff] }
 0x117   : > { %v667_v25 = vmul.f32 %v1790_v20, %v666_v24 }
 0x119   : > { %v671_v27 = vsel %vm670_vm4, %v1790_v20, %v667_v25 }
 0x11a   : > { %v672_v28 = vmul.f32 %v671_v27, %v655_v12 }
 0x11c   : > { %v676_v30 = vmul.f32 %v1768_v26, %v672_v28 }
 0x11e   : > { %v1983_v31 = vadd.f32 %v1769_v29, %v676_v30 }
 0x120   : > { %v682_v32 = vpack.c.bf16 %v1983_v31, %v1983_v31 }
 0x122   : > { %1601 = vmatmul.msk.bf16.vlgmr.msra.gmra.mxu0 %vm643_vm0, %v682_v32 }
 0x19f   : > { %v715_v34 = vpop.f32.mrf.mxu0 }
 0x1a0   : > { %v716_v35 = vadd.f32 %v1770_v33, %v715_v34 }
 0x1a2   : > { %v723_v36 = vpack.c.bf16 %v716_v35, %v716_v35 }
 0x1a4   : > { %788 = vrot.lane.b32.xlu2 %v723_v36, %s2221_s0  ;;  %725 = vrot.lane.b32.xlu1 %v723_v36, %s1835_s1 }
 0x1a7   : > { %v717_v37 = vpop.f32.mrf.mxu0 }
 0x1ac   : > { %790 = vrot.lane.b32.xlu1 %v723_v36, %s1836_s22 }
 0x1fe   : > { %v789_v42 = vpop.permute.xlu2 %788 }
 0x216   : > { %v726_v38 = vpop.permute.xlu1 %725 }
 0x217   : > { %v732_v39 = vsel %vm727_vm5, %v726_v38, 0 }
 0x218   : > { %741 = vmatpush.bf16.xpose.msra.mxu1 %v732_v39 }
 0x21e   : > { %v791_v40 = vpop.permute.xlu1 %790 }
 0x21f   : > { %1602 = vmatmul.msk.bf16.vlgmr.msra.gmra.mxu1 %vm727_vm5, %v723_v36  ;;  %v796_v41 = vsel %vm727_vm5, %v791_v40, 0 }
 0x220   : > { %805 = vmatpush.bf16.xpose.msra.mxu3 %v796_v41  ;;  %885 = vmatpush.bf16.msrb.mxu1 %v1734_v13 }
 0x227   : > { %1604 = vmatmul.msk.bf16.vlgmr.msra.gmra.mxu3 %vm727_vm5, %v789_v42 }
 0x29c   : > { %v743_v44 = vpop.f32.mrf.mxu1 }
 0x29d   : > { %v747_v45 = vmul.f32 0.25, %v743_v44 }
 0x29f   : > { %v751_v46 = vadd.f32 %v2003_v43, %v747_v45 }
 0x2a1   : > { %v753_v47 = vsel %vm752_vm6, %v751_v46, -inf }
 0x2a2   : > { %754 = vmax.xlane.f32.xlu2 %v753_v47  ;;  %v1773_v47 = vld [vmem:[%s2204_s8] ss:$0 sm:$0xff] }
 0x2a4   : > { %v745_v48 = vpop.f32.mrf.mxu1 }
 0x2aa   : > { %v807_v49 = vpop.f32.mrf.mxu3 }
 0x2ab   : > { %v811_v50 = vmul.f32 0.25, %v807_v49 }
 0x2ad   : > { %v812_v51 = vadd.f32 %v2003_v43, %v811_v50  ;;  %v1774_v50 = vld [vmem:[%s2205_s9] ss:$0 sm:$0xff] }
 0x2af   : > { %v813_v52 = vsel %vm752_vm6, %v812_v51, -inf }
 0x2b0   : > { %814 = vmax.xlane.f32.xlu0 %v813_v52 }
 0x2b2   : > { %v809_v53 = vpop.f32.mrf.mxu3 }
 0x2ba   : > { %825 = vrot.lane.b32.xlu2 %v723_v36, %s2220_s25  ;;  %s2232_s25 = smov 112  }
 0x2c4   : > { %765 = vrot.lane.b32.xlu0 %v723_v36, %s2219_s26  ;;  %v1737_v36 = vld [vmem:[%s2206_s10 + $0x8] sm:$0xff] }
 0x2c5   : > { %959 = vmatpush.bf16.msrb.mxu3 %v1737_v36 }
 0x315   : > { %v755_v54 = vpop.xlane.xlu2 %754 }
 0x316   : > { %v756_v55 = vsub.f32 %v751_v46, %v755_v54  ;;  %v1741_v54 = vld [vmem:[%s2208_s12 + $0x18] sm:$0xff] }
 0x318   : > { %v757_v56 = vmul.f32 1.442695, %v756_v55  ;;  %v1740_v55 = vld [vmem:[%s2208_s12 + $0x10] sm:$0xff] }
 0x31a   : > { %1791 = vpow2.f32 %v757_v56  ;;  %v1739_v56 = vld [vmem:[%s2208_s12 + $0x8] sm:$0xff] }
 0x31d   : > { %v826_v0 = vpop.permute.xlu2 %825 }
 0x31e   : > { %v831_v3 = vsel %vm770_vm7, %v826_v0, 0 }
 0x320   : > { %v1792_v57 = vpop.eup %1791 }
 0x321   : > { %v759_v58 = vsel %vm752_vm6, %v1792_v57, 0.0 }
 0x322   : > { %760 = vadd.xlane.f32.xlu1 %v759_v58  ;;  %v1775_v58 = vld [vmem:[%s2207_s11] ss:$0 sm:$0xff] }
 0x323   : > { %v815_v59 = vpop.xlane.xlu0 %814 }
 0x324   : > { %v816_v60 = vsub.f32 %v812_v51, %v815_v59 }
 0x326   : > { %v817_v61 = vmul.f32 1.442695, %v816_v60 }
 0x328   : > { %1793 = vpow2.f32 %v817_v61 }
 0x32e   : > { %v1794_v62 = vpop.eup %1793 }
 0x32f   : > { %v819_v63 = vsel %vm752_vm6, %v1794_v62, 0.0 }
 0x330   : > { %820 = vadd.xlane.f32.xlu0 %v819_v63 }
 0x336   : > { %v766_v1 = vpop.permute.xlu0 %765 }
 0x337   : > { %v772_v2 = vsel %vm770_vm7, %v766_v1, 0 }
 0x338   : > { %781 = vmatpush.bf16.msra.mxu2 %v772_v2 }
 0x33c   : > { %840 = vmatpush.bf16.msrb.mxu2 %v831_v3 }
 0x395   : > { %v761_v4 = vpop.xlane.xlu1 %760 }
 0x396   : > { %1795 = vrcp.f32 %v761_v4 }
 0x39c   : > { %v1796_v5 = vpop.eup %1795 }
 0x39d   : > { %v763_v6 = vmul.f32 %v1796_v5, %v1792_v57  ;;  %v1738_v57 = vld [vmem:[%s2208_s12] sm:$0xff] }
 0x39f   : > { %v764_v7 = vpack.c.bf16 %v763_v6, %v763_v6 }
 0x3a1   : > { %1603 = vmatmul.msk.bf16.vlgmr.msra.gmra.mxu2 %vm752_vm6, %v764_v7 }
 0x3a2   : > { %1020 = vmatpush.bf16.msra.mxu2 %v1741_v54 }
 0x3a3   : > { %v821_v8 = vpop.xlane.xlu0 %820 }
 0x3a4   : > { %1797 = vrcp.f32 %v821_v8  ;;  %v1776_v8 = vld [vmem:[%s2209_s13] ss:$0 sm:$0xff] }
 0x3a6   : > { %1021 = vmatpush.bf16.msra.mxu2 %v1740_v55 }
 0x3aa   : > { %v1798_v10 = vpop.eup %1797  ;;  %1022 = vmatpush.bf16.msra.mxu2 %v1739_v56 }
 0x3ab   : > { %v823_v11 = vmul.f32 %v1798_v10, %v1794_v62 }
 0x3ad   : > { %v824_v12 = vpack.c.bf16 %v823_v11, %v823_v11 }
 0x3ae   : > { %1023 = vmatpush.bf16.msra.mxu2 %v1738_v57 }
 0x3b1   : > { %1605 = vmatmul.msk.bf16.vlgmr.msrb.gmra.mxu2 %vm752_vm6, %v824_v12 }
 0x424   : > { %v783_v15 = vpop.f32.mrf.mxu2 }
 0x425   : > { %v787_v16 = vpack.c.bf16 %v783_v15, %v783_v15 }
 0x427   : > { %1615 = vmatmul.msk.bf16.vlgmr.msrb.gmra.mxu1 %vm727_vm5, %v787_v16 }
 0x42c   : > { %v785_v17 = vpop.f32.mrf.mxu2 }
 0x434   : > { %v842_v18 = vpop.f32.mrf.mxu2 }
 0x435   : > { %v846_v19 = vpack.c.bf16 %v842_v18, %v842_v18 }
 0x437   : > { %1610 = vmatmul.msk.bf16.vlgmr.msrb.gmra.mxu0 %vm727_vm5, %v846_v19 }
 0x43c   : > { %v844_v20 = vpop.f32.mrf.mxu2 }
 0x43d   : > { %v1743_v20 = vld [vmem:[%s2229_s21 + $0x18] sm:$0xff] }
 0x43e   : > { %1094 = vmatpush.bf16.msra.mxu0 %v1743_v20 }
 0x4a4   : > { %v887_v21 = vpop.f32.mrf.mxu1 }
 0x4ac   : > { %v889_v22 = vpop.f32.mrf.mxu1 }
 0x4b4   : > { %v865_v24 = vpop.f32.mrf.mxu0 }
 0x4b5   : > { %v888_v25 = vadd.f32 %v887_v21, %v865_v24  ;;  %v1742_v21 = vld [vmem:[%s2229_s21 + $0x10] sm:$0xff] }
 0x4b6   : > { %1095 = vmatpush.bf16.msra.mxu0 %v1742_v21 }
 0x4b7   : > { %v895_v26 = vadd.f32 %v1772_v23, %v888_v25 }
 0x4b9   : > { %v896_v27 = vadd.f32 %v895_v26, %v1983_v31  ;;  %v1736_v31 = vld [vmem:[%s2206_s10] sm:$0xff] }
 0x4ba   : > { %960 = vmatpush.bf16.msrb.mxu3 %v1736_v31 }
 0x4bb   : > { %v899_v28 = vsel %vm643_vm0, %v896_v27, 0.0 }
 0x4bc   : > { %900 = vadd.xlane.f32.xlu1 %v899_v28  ;;  %v867_v29 = vpop.f32.mrf.mxu0 }
 0x52f   : > { %v901_v30 = vpop.xlane.xlu1 %900 }
 0x530   : > { %v902_v32 = vmul.f32 %v901_v30, %v1966_v9 }
 0x532   : > { %v903_v33 = vsub.f32 %v896_v27, %v902_v32  ;;  %v1777_v32 = vld [vmem:[%s2210_s14] ss:$0 sm:$0xff] }
 0x534   : > { %v904_v34 = vmul.f32 %v903_v33, %v903_v33 }
 0x536   : > { %v905_v35 = vsel %vm643_vm0, %v904_v34, 0.0  ;;  %v1778_v34 = vld [vmem:[%s2211_s15] ss:$0 sm:$0xff] }
 0x537   : > { %906 = vadd.xlane.f32.xlu1 %v905_v35 }
 0x5aa   : > { %v907_v37 = vpop.xlane.xlu1 %906 }
 0x5ab   : > { %v908_v38 = vmul.f32 %v907_v37, %v1966_v9 }
 0x5ad   : > { %v909_v39 = vadd.f32 1e-12, %v908_v38  ;;  %v1779_v38 = vld [vmem:[%s2201_s5 + $0x1] ss:$0 sm:$0xff] }
 0x5af   : > { %1799 = vrsqrt.f32 %v909_v39  ;;  %vm916_vm9 = vweird.f32 %v909_v39 }
 0x5b5   : > { %v1800_v40 = vpop.eup %1799 }
 0x5b6   : > { %v911_v41 = vmul.f32 %v1800_v40, %v909_v39  ;;  %vm917_vm8 = vweird.f32 %v1800_v40 }
 0x5b7   : > { %vm918_vm10 = vmor %vm916_vm9, %vm917_vm8  ;;  %vm1529_vm8 = vcmask 0  }
 0x5b8   : > { %v912_v42 = vmul.f32 %v1800_v40, %v911_v41 }
 0x5ba   : > { %v913_v44 = vmul.f32 0.5, %v912_v42 }
 0x5bc   : > { %v914_v45 = vsub.f32 1.5, %v913_v44 }
 0x5be   : > { %v915_v46 = vmul.f32 %v1800_v40, %v914_v45 }
 0x5c0   : > { %v919_v48 = vsel %vm918_vm10, %v1800_v40, %v915_v46 }
 0x5c1   : > { %v920_v49 = vmul.f32 %v919_v48, %v903_v33 }
 0x5c3   : > { %v924_v51 = vmul.f32 %v1773_v47, %v920_v49 }
 0x5c5   : > { %v928_v52 = vadd.f32 %v1774_v50, %v924_v51 }
 0x5c7   : > { %v929_v53 = vpack.c.bf16 %v928_v52, %v928_v52 }
 0x5c9   : > { %1624 = vmatmul.msk.bf16.vlgmr.msrb.gmra.mxu3 %vm643_vm0, %v929_v53 }
 0x64c   : > { %v962_v59 = vpop.f32.mrf.mxu3 }
 0x64d   : > { %v963_v60 = vadd.f32 %v1775_v58, %v962_v59 }
 0x64f   : > { %v967_v61 = vmul.f32 0.044715, %v963_v60  ;;  %v966_v4 = vmul.f32 0.5, %v963_v60 }
 0x651   : > { %v968_v62 = vmul.f32 %v967_v61, %v963_v60 }
 0x653   : > { %v969_v63 = vmul.f32 %v968_v62, %v963_v60 }
 0x654   : > { %v964_v0 = vpop.f32.mrf.mxu3 }
 0x655   : > { %v970_v1 = vadd.f32 %v969_v63, %v963_v60 }
 0x657   : > { %v971_v2 = vmul.f32 0.7978846, %v970_v1 }
 0x659   : > { %1801 = vtanh.f32 %v971_v2 }
 0x65f   : > { %v1802_v3 = vpop.eup %1801 }
 0x660   : > { %v973_v5 = vadd.f32 1.0, %v1802_v3 }
 0x662   : > { %v974_v6 = vmul.f32 %v973_v5, %v966_v4 }
 0x664   : > { %v975_v7 = vpack.c.bf16 %v974_v6, %v974_v6 }
 0x666   : > { %1641 = vmatmul.msk.bf16.vlgmr.msra.gmra.mxu2 %vm1012_vm11, %v975_v7 }
 0x6e9   : > { %v1025_v10 = vpop.f32.mrf.mxu2 }
 0x6ea   : > { %v1026_v11 = vadd.f32 %v1776_v8, %v1025_v10 }
 0x6ec   : > { %v1029_v12 = vadd.f32 %v1026_v11, %v928_v52 }
 0x6ee   : > { %v1032_v13 = vsel %vm643_vm0, %v1029_v12, 0.0 }
 0x6ef   : > { %1033 = vadd.xlane.f32.xlu2 %v1032_v13 }
 0x6f1   : > { %v1027_v14 = vpop.f32.mrf.mxu2 }
 0x762   : > { %v1034_v15 = vpop.xlane.xlu2 %1033 }
 0x763   : > { %v1035_v16 = vmul.f32 %v1034_v15, %v1966_v9 }
 0x765   : > { %v1036_v17 = vsub.f32 %v1029_v12, %v1035_v16 }
 0x767   : > { %v1037_v18 = vmul.f32 %v1036_v17, %v1036_v17 }
 0x769   : > { %v1038_v19 = vsel %vm643_vm0, %v1037_v18, 0.0  ;;  %v1745_v18 = vld [vmem:[%s2202_s6 + $0x18] sm:$0xff] }
 0x76a   : > { %1039 = vadd.xlane.f32.xlu1 %v1038_v19 }
 0x7dd   : > { %v1040_v22 = vpop.xlane.xlu1 %1039 }
 0x7de   : > { %v1041_v23 = vmul.f32 %v1040_v22, %v1966_v9 }
 0x7e0   : > { %v1042_v24 = vadd.f32 1e-12, %v1041_v23 }
 0x7e2   : > { %1803 = vrsqrt.f32 %v1042_v24  ;;  %vm1049_vm13 = vweird.f32 %v1042_v24 }
 0x7e8   : > { %v1804_v25 = vpop.eup %1803 }
 0x7e9   : > { %v1044_v26 = vmul.f32 %v1804_v25, %v1042_v24  ;;  %vm1050_vm12 = vweird.f32 %v1804_v25 }
 0x7ea   : > { %vm1051_vm14 = vmor %vm1049_vm13, %vm1050_vm12 }
 0x7eb   : > { %v1045_v27 = vmul.f32 %v1804_v25, %v1044_v26 }
 0x7ed   : > { %v1046_v28 = vmul.f32 0.5, %v1045_v27  ;;  %v1780_v27 = vld [vmem:[%s2203_s7 + $0x1] ss:$0 sm:$0xff] }
 0x7ef   : > { %v1047_v29 = vsub.f32 1.5, %v1046_v28 }
 0x7f1   : > { %v1048_v30 = vmul.f32 %v1804_v25, %v1047_v29 }
 0x7f3   : > { %v1052_v33 = vsel %vm1051_vm14, %v1804_v25, %v1048_v30 }
 0x7f4   : > { %v1053_v35 = vmul.f32 %v1052_v33, %v1036_v17  ;;  %v1744_v17 = vld [vmem:[%s2202_s6 + $0x10] sm:$0xff] }
 0x7f6   : > { %v1057_v36 = vmul.f32 %v1777_v32, %v1053_v35 }
 0x7f8   : > { %v2081_v31 = vadd.f32 %v1778_v34, %v1057_v36 }
 0x7fa   : > { %v1062_v37 = vpack.c.bf16 %v2081_v31, %v2081_v31 }
 0x7fc   : > { %1655 = vmatmul.msk.bf16.vlgmr.msra.gmra.mxu0 %vm643_vm0, %v1062_v37 }
 0x879   : > { %v1097_v39 = vpop.f32.mrf.mxu0 }
 0x87a   : > { %v1098_v40 = vadd.f32 %v1779_v38, %v1097_v39 }
 0x87c   : > { %v1106_v41 = vpack.c.bf16 %v1098_v40, %v1098_v40  ;;  %v1747_v40 = vld [vmem:[%s2206_s10 + $0x18] sm:$0xff] }
 0x87e   : > { %1167 = vrot.lane.b32.xlu0 %v1106_v41, %s1836_s22  ;;  %1108 = vrot.lane.b32.xlu1 %v1106_v41, %s1835_s1  ;;  %s2233_s1 = smov 48   ;;  %s2234_s22 = smov 64  }
 0x881   : > { %v1099_v42 = vpop.f32.mrf.mxu0 }
 0x886   : > { %1165 = vrot.lane.b32.xlu0 %v1106_v41, %s2232_s25 }
 0x8f0   : > { %v1168_v44 = vpop.permute.xlu0 %1167  ;;  %v1109_v45 = vpop.permute.xlu1 %1108 }
 0x8f1   : > { %v1173_v46 = vsel %vm727_vm5, %v1168_v44, 0  ;;  %v1114_v47 = vsel %vm727_vm5, %v1109_v45, 0 }
 0x8f2   : > { %1123 = vmatpush.bf16.xpose.msra.mxu1 %v1114_v47  ;;  %1182 = vmatpush.bf16.xpose.msrb.mxu2 %v1173_v46 }
 0x8f8   : > { %v1166_v48 = vpop.permute.xlu0 %1165 }
 0x8f9   : > { %1660 = vmatmul.msk.bf16.vlgmr.msra.gmra.mxu1 %vm727_vm5, %v1106_v41  ;;  %1662 = vmatmul.msk.bf16.vlgmr.msrb.gmra.mxu2 %vm727_vm5, %v1166_v48 }
 0x8fa   : > { %1240 = vmatpush.bf16.msrb.mxu1 %v1745_v18  ;;  %1341 = vmatpush.bf16.msra.mxu2 %v1747_v40 }
 0x976   : > { %v1125_v49 = vpop.f32.mrf.mxu1 }
 0x977   : > { %v1129_v50 = vmul.f32 0.25, %v1125_v49 }
 0x979   : > { %v1130_v51 = vadd.f32 %v2003_v43, %v1129_v50 }
 0x97b   : > { %v1131_v52 = vsel %vm752_vm6, %v1130_v51, -inf }
 0x97c   : > { %v1184_v53 = vpop.f32.mrf.mxu2  ;;  %1132 = vmax.xlane.f32.xlu1 %v1131_v52 }
 0x97d   : > { %v1188_v54 = vmul.f32 0.25, %v1184_v53  ;;  %v1782_v53 = vld [vmem:[%s2205_s9 + $0x1] ss:$0 sm:$0xff] }
 0x97e   : > { %v1127_v55 = vpop.f32.mrf.mxu1 }
 0x97f   : > { %v1189_v56 = vadd.f32 %v2003_v43, %v1188_v54 }
 0x981   : > { %v1190_v57 = vsel %vm752_vm6, %v1189_v56, -inf }
 0x982   : > { %1191 = vmax.xlane.f32.xlu0 %v1190_v57 }
 0x984   : > { %v1186_v58 = vpop.f32.mrf.mxu2 }
 0x985   : > { %v1751_v58 = vld [vmem:[%s2208_s12 + $0x38] sm:$0xff] }
 0x995   : > { %1202 = vrot.lane.b32.xlu1 %v1106_v41, %s2233_s1  ;;  %s638_s1 = scalar_lea.vmem %s2216_s20, %s2236_s24 }
 0x9ef   : > { %v1133_v59 = vpop.xlane.xlu1 %1132 }
 0x9f0   : > { %v1134_v60 = vsub.f32 %v1130_v51, %v1133_v59  ;;  %v1781_v51 = vld [vmem:[%s2204_s8 + $0x1] ss:$0 sm:$0xff]  ;;  %v1750_v59 = vld [vmem:[%s2208_s12 + $0x30] sm:$0xff] }
 0x9f2   : > { %v1135_v61 = vmul.f32 1.442695, %v1134_v60  ;;  %v1749_v60 = vld [vmem:[%s2208_s12 + $0x28] sm:$0xff] }
 0x9f4   : > { %1805 = vpow2.f32 %v1135_v61  ;;  %v1748_v61 = vld [vmem:[%s2208_s12 + $0x20] sm:$0xff] }
 0x9f5   : > { %v1192_v43 = vpop.xlane.xlu0 %1191 }
 0x9f6   : > { %v1193_v2 = vsub.f32 %v1189_v56, %v1192_v43 }
 0x9f8   : > { %v1194_v3 = vmul.f32 1.442695, %v1193_v2 }
 0x9fa   : > { %v1806_v62 = vpop.eup %1805  ;;  %1807 = vpow2.f32 %v1194_v3 }
 0x9fb   : > { %v1137_v63 = vsel %vm752_vm6, %v1806_v62, 0.0 }
 0x9fc   : > { %1138 = vadd.xlane.f32.xlu2 %v1137_v63 }
 0xa00   : > { %v1808_v4 = vpop.eup %1807 }
 0xa01   : > { %v1196_v5 = vsel %vm752_vm6, %v1808_v4, 0.0 }
 0xa07   : > { %v1203_v0 = vpop.permute.xlu1 %1202 }
 0xa08   : > { %v1208_v1 = vsel %vm770_vm7, %v1203_v0, 0 }
 0xa09   : > { %1217 = vmatpush.bf16.msrb.mxu0 %v1208_v1 }
 0xa0d   : > { %1403 = vmatpush.bf16.msra.mxu0 %v1751_v58 }
 0xa11   : > { %1404 = vmatpush.bf16.msra.mxu0 %v1750_v59 }
 0xa14   : > { %1143 = vrot.lane.b32.xlu2 %v1106_v41, %s2234_s22 }
 0xa15   : > { %1405 = vmatpush.bf16.msra.mxu0 %v1749_v60 }
 0xa19   : > { %1406 = vmatpush.bf16.msra.mxu0 %v1748_v61 }
 0xa3d   : > { %1197 = vadd.xlane.f32.xlu2 %v1196_v5 }
 0xa6f   : > { %v1139_v6 = vpop.xlane.xlu2 %1138 }
 0xa70   : > { %1809 = vrcp.f32 %v1139_v6 }
 0xa76   : > { %v1810_v7 = vpop.eup %1809 }
 0xa77   : > { %v1141_v8 = vmul.f32 %v1810_v7, %v1806_v62  ;;  %v1144_v10 = vpop.permute.xlu2 %1143  ;;  %v1783_v62 = vld [vmem:[%s2207_s11 + $0x1] ss:$0 sm:$0xff] }
 0xa78   : > { %v1149_v11 = vsel %vm770_vm7, %v1144_v10, 0 }
 0xa79   : > { %v1142_v12 = vpack.c.bf16 %v1141_v8, %v1141_v8  ;;  %1158 = vmatpush.bf16.msra.mxu3 %v1149_v11 }
 0xa7c   : > { %1661 = vmatmul.msk.bf16.vlgmr.msra.gmra.mxu3 %vm752_vm6, %v1142_v12  ;;  %v1784_v12 = vld [vmem:[%s2209_s13 + $0x1] ss:$0 sm:$0xff] }
 0xa7d   : > { %1262 = vmatpush.bf16.msrb.mxu3 %v1744_v17 }
 0xab0   : > { %v1198_v13 = vpop.xlane.xlu2 %1197 }
 0xab1   : > { %1811 = vrcp.f32 %v1198_v13 }
 0xab7   : > { %v1812_v14 = vpop.eup %1811 }
 0xab8   : > { %v1200_v15 = vmul.f32 %v1812_v14, %v1808_v4 }
 0xaba   : > { %v1201_v16 = vpack.c.bf16 %v1200_v15, %v1200_v15 }
 0xabc   : > { %1663 = vmatmul.msk.bf16.vlgmr.msrb.gmra.mxu0 %vm752_vm6, %v1201_v16 }
 0xaff   : > { %v1160_v19 = vpop.f32.mrf.mxu3 }
 0xb00   : > { %v1164_v20 = vpack.c.bf16 %v1160_v19, %v1160_v19 }
 0xb02   : > { %1673 = vmatmul.msk.bf16.vlgmr.msrb.gmra.mxu3 %vm727_vm5, %v1164_v20 }
 0xb07   : > { %v1162_v21 = vpop.f32.mrf.mxu3 }
 0xb39   : > { %v1219_v22 = vpop.f32.mrf.mxu0 }
 0xb3a   : > { %v1223_v23 = vpack.c.bf16 %v1219_v22, %v1219_v22 }
 0xb3c   : > { %1668 = vmatmul.msk.bf16.vlgmr.msrb.gmra.mxu1 %vm727_vm5, %v1223_v23  ;;  %v1753_v23 = vld [vmem:[%s2212_s16 + $0x8] sm:$0xff] }
 0xb3d   : > { %1474 = vmatpush.bf16.msra.mxu1 %v1753_v23 }
 0xb41   : > { %v1221_v24 = vpop.f32.mrf.mxu0 }
 0xb42   : > { %v1752_v24 = vld [vmem:[%s2212_s16] sm:$0xff] }
 0xb43   : > { %1475 = vmatpush.bf16.msra.mxu1 %v1752_v24 }
 0xb85   : > { %v1264_v25 = vpop.f32.mrf.mxu3 }
 0xb8d   : > { %v1266_v26 = vpop.f32.mrf.mxu3 }
 0xbb9   : > { %v1242_v28 = vpop.f32.mrf.mxu1 }
 0xbba   : > { %v1265_v29 = vadd.f32 %v1264_v25, %v1242_v28 }
 0xbbc   : > { %v1273_v30 = vadd.f32 %v1780_v27, %v1265_v29 }
 0xbbe   : > { %v1274_v32 = vadd.f32 %v1273_v30, %v2081_v31  ;;  %v1746_v31 = vld [vmem:[%s2206_s10 + $0x10] sm:$0xff] }
 0xbbf   : > { %1342 = vmatpush.bf16.msra.mxu2 %v1746_v31  ;;  %v1485_v31 = vld [vmem:[%s2214_s18 + $0x18] sm:$0xff] }
 0xbc0   : > { %v1279_v33 = vsel %vm643_vm0, %v1274_v32, 0.0  ;;  %1502 = vmatpush.msra.mxu3 %v1485_v31 }
 0xbc1   : > { %1280 = vadd.xlane.f32.xlu0 %v1279_v33  ;;  %v1244_v34 = vpop.f32.mrf.mxu1 }
 0xc34   : > { %v1281_v35 = vpop.xlane.xlu0 %1280 }
 0xc35   : > { %v1282_v36 = vmul.f32 %v1281_v35, %v1966_v9  ;;  %v1785_v35 = vld [vmem:[%s2210_s14 + $0x1] ss:$0 sm:$0xff] }
 0xc37   : > { %v1283_v37 = vsub.f32 %v1274_v32, %v1282_v36 }
 0xc39   : > { %v1284_v38 = vmul.f32 %v1283_v37, %v1283_v37 }
 0xc3b   : > { %v1285_v39 = vsel %vm643_vm0, %v1284_v38, 0.0 }
 0xc3c   : > { %1286 = vadd.xlane.f32.xlu0 %v1285_v39 }
 0xcaf   : > { %v1287_v41 = vpop.xlane.xlu0 %1286 }
 0xcb0   : > { %v1288_v42 = vmul.f32 %v1287_v41, %v1966_v9  ;;  %v1484_v41 = vld [vmem:[%s2214_s18 + $0x10] sm:$0xff] }
 0xcb1   : > { %1503 = vmatpush.msra.mxu3 %v1484_v41 }
 0xcb2   : > { %v1289_v44 = vadd.f32 1e-12, %v1288_v42  ;;  %v1483_v42 = vld [vmem:[%s2214_s18 + $0x8] sm:$0xff] }
 0xcb3   : > { %1504 = vmatpush.msra.mxu3 %v1483_v42 }
 0xcb4   : > { %1813 = vrsqrt.f32 %v1289_v44  ;;  %vm1296_vm1 = vweird.f32 %v1289_v44 }
 0xcba   : > { %v1814_v45 = vpop.eup %1813 }
 0xcbb   : > { %v1291_v46 = vmul.f32 %v1814_v45, %v1289_v44  ;;  %vm1297_vm15 = vweird.f32 %v1814_v45  ;;  %v1482_v44 = vld [vmem:[%s2214_s18] sm:$0xff] }
 0xcbc   : > { %vm1298_vm2 = vmor %vm1296_vm1, %vm1297_vm15  ;;  %1505 = vmatpush.msra.mxu3 %v1482_v44 }
 0xcbd   : > { %v1292_v47 = vmul.f32 %v1814_v45, %v1291_v46 }
 0xcbf   : > { %v1293_v48 = vmul.f32 0.5, %v1292_v47 }
 0xcc1   : > { %v1294_v49 = vsub.f32 1.5, %v1293_v48 }
 0xcc3   : > { %v1295_v50 = vmul.f32 %v1814_v45, %v1294_v49 }
 0xcc5   : > { %v1299_v52 = vsel %vm1298_vm2, %v1814_v45, %v1295_v50  ;;  %v1452_v45 = vld [vmem:[%s2213_s17] sm:$0x1] }
 0xcc6   : > { %v1300_v54 = vmul.f32 %v1299_v52, %v1283_v37  ;;  %v1486_v50 = vld [vmem:[#allocation2] sm:$0x1] }
 0xcc8   : > { %v1304_v55 = vmul.f32 %v1781_v51, %v1300_v54 }
 0xcca   : > { %v1308_v56 = vadd.f32 %v1782_v53, %v1304_v55 }
 0xccc   : > { %v1309_v57 = vpack.c.bf16 %v1308_v56, %v1308_v56 }
 0xcce   : > { %1690 = vmatmul.msk.bf16.vlgmr.msra.gmra.mxu2 %vm643_vm0, %v1309_v57 }
 0xd51   : > { %v1344_v63 = vpop.f32.mrf.mxu2 }
 0xd52   : > { %v1345_v0 = vadd.f32 %v1783_v62, %v1344_v63 }
 0xd54   : > { %v1349_v1 = vmul.f32 0.044715, %v1345_v0  ;;  %v1348_v7 = vmul.f32 0.5, %v1345_v0 }
 0xd56   : > { %v1350_v43 = vmul.f32 %v1349_v1, %v1345_v0 }
 0xd58   : > { %v1351_v2 = vmul.f32 %v1350_v43, %v1345_v0 }
 0xd59   : > { %v1346_v3 = vpop.f32.mrf.mxu2 }
 0xd5a   : > { %v1352_v4 = vadd.f32 %v1351_v2, %v1345_v0 }
 0xd5c   : > { %v1353_v5 = vmul.f32 0.7978846, %v1352_v4 }
 0xd5e   : > { %1815 = vtanh.f32 %v1353_v5 }
 0xd64   : > { %v1816_v6 = vpop.eup %1815 }
 0xd65   : > { %v1355_v8 = vadd.f32 1.0, %v1816_v6 }
 0xd67   : > { %v1356_v10 = vmul.f32 %v1355_v8, %v1348_v7 }
 0xd69   : > { %v1357_v11 = vpack.c.bf16 %v1356_v10, %v1356_v10 }
 0xd6b   : > { %1716 = vmatmul.msk.bf16.vlgmr.msra.gmra.mxu0 %vm1012_vm11, %v1357_v11 }
 0xde8   : > { %v1408_v13 = vpop.f32.mrf.mxu0 }
 0xde9   : > { %v1409_v14 = vadd.f32 %v1784_v12, %v1408_v13 }
 0xdeb   : > { %v1412_v15 = vadd.f32 %v1409_v14, %v1308_v56 }
 0xded   : > { %v1417_v16 = vsel %vm643_vm0, %v1412_v15, 0.0 }
 0xdee   : > { %1418 = vadd.xlane.f32.xlu0 %v1417_v16 }
 0xdf0   : > { %v1410_v17 = vpop.f32.mrf.mxu0 }
 0xe61   : > { %v1419_v18 = vpop.xlane.xlu0 %1418 }
 0xe62   : > { %v1420_v19 = vmul.f32 %v1419_v18, %v1966_v9 }
 0xe64   : > { %v1421_v20 = vsub.f32 %v1412_v15, %v1420_v19 }
 0xe66   : > { %v1422_v21 = vmul.f32 %v1421_v20, %v1421_v20 }
 0xe68   : > { %v1423_v22 = vsel %vm643_vm0, %v1422_v21, 0.0 }
 0xe69   : > { %1424 = vadd.xlane.f32.xlu1 %v1423_v22 }
 0xedc   : > { %v1425_v25 = vpop.xlane.xlu1 %1424 }
 0xedd   : > { %v1426_v26 = vmul.f32 %v1425_v25, %v1966_v9  ;;  %v1786_v9 = vld [vmem:[%s2211_s15 + $0x1] ss:$0 sm:$0xff] }
 0xedf   : > { %v1427_v27 = vadd.f32 1e-12, %v1426_v26 }
 0xee1   : > { %1817 = vrsqrt.f32 %v1427_v27  ;;  %vm1434_vm4 = vweird.f32 %v1427_v27 }
 0xee7   : > { %v1818_v28 = vpop.eup %1817 }
 0xee8   : > { %v1429_v29 = vmul.f32 %v1818_v28, %v1427_v27  ;;  %vm1435_vm3 = vweird.f32 %v1818_v28 }
 0xee9   : > { %vm1436_vm5 = vmor %vm1434_vm4, %vm1435_vm3 }
 0xeea   : > { %v1430_v30 = vmul.f32 %v1818_v28, %v1429_v29 }
 0xeec   : > { %v1431_v32 = vmul.f32 0.5, %v1430_v30 }
 0xeee   : > { %v1432_v33 = vsub.f32 1.5, %v1431_v32 }
 0xef0   : > { %v1433_v34 = vmul.f32 %v1818_v28, %v1432_v33 }
 0xef2   : > { %v1437_v36 = vsel %vm1436_vm5, %v1818_v28, %v1433_v34 }
 0xef3   : > { %v1438_v37 = vmul.f32 %v1437_v36, %v1421_v20 }
 0xef5   : > { %v1442_v38 = vmul.f32 %v1785_v35, %v1438_v37 }
 0xef7   : > { %v1446_v39 = vadd.f32 %v1786_v9, %v1442_v38 }
 0xef9   : > { %v1447_v40 = vpack.c.bf16 %v1446_v39, %v1446_v39 }
 0xefb   : > { %1727 = vmatmul.msk.bf16.vlgmr.msra.gmra.mxu1 %vm643_vm0, %v1447_v40 }
 0xf78   : > { %v1477_v46 = vpop.f32.mrf.mxu1 }
 0xf79   : > { %v1478_v47 = vadd.f32 %v1477_v46, %v1452_v45 }
 0xf7b   : > { %1819 = vtanh.f32 %v1478_v47 }
 0xf80   : > { %v1479_v48 = vpop.f32.mrf.mxu1 }
 0xf81   : > { %v1820_v49 = vpop.eup %1819 }
 0xf82   : > { %1728 = vmatmul.msk.f32.vlgmr.msra.gmra.mxu3 %vm643_vm0, %v1820_v49 }
0x1005   : > { %v1507_v51 = vpop.f32.mrf.mxu3 }
0x1006   : > { %v1508_v52 = vadd.f32 %v1507_v51, %v1486_v50 }
0x1008   : > { %v1729_v53 = vmul.f32 -1.442695, %v1508_v52 }
0x100a   : > { %1821 = vpow2.f32 %v1729_v53 }
0x1010   : > { %v1822_v54 = vpop.eup %1821 }
0x1011   : > { %v1513_v55 = vadd.f32 1.0, %v1822_v54 }
0x1013   : > { %1823 = vrcp.f32 %v1513_v55  ;;  %v1525_v59 = vand.u32 2147483648, %v1513_v55  ;;  %v1523_v61 = vand.u32 2147483647, %v1513_v55  ;;  %vm1519_vm7 = vweird.f32 %v1513_v55 }
0x1015   : > { %v1526_v63 = vor.u32 1.1754944e-38, %v1525_v59  ;;  %vm1524_vm9 = vcmp.eq.f32.partialorder %v1523_v61, 8.507059e+37 }
0x1019   : > { %v1824_v56 = vpop.eup %1823 }
0x101a   : > { %v1515_v57 = vmul.f32 %v1824_v56, %v1513_v55  ;;  %vm1520_vm6 = vweird.f32 %v1824_v56 }
0x101b   : > { %vm1521_vm0 = vmor %vm1519_vm7, %vm1520_vm6 }
0x101c   : > { %v1516_v58 = vsub.f32 1.0, %v1515_v57 }
0x101e   : > { %v1517_v60 = vmul.f32 %v1824_v56, %v1516_v58 }
0x1020   : > { %v1518_v62 = vadd.f32 %v1824_v56, %v1517_v60 }
0x1022   : > { %v1522_v0 = vsel %vm1521_vm0, %v1824_v56, %v1518_v62 }
0x1023   : > { %v1527_v1 = vsel %vm1524_vm9, %v1526_v63, %v1522_v0 }
0x1024   : > { %1530 = vst.msk [vmem:[%s638_s1] sm:$0x1] %vm1529_vm8, %v1527_v1 }
0x1025 PF: > { %s32_s23 = sadd.s32 1, %s1831_s23  }
0x1026   : > { %p29_p4 = scmp.ge.s32.totalorder %s32_s23, 4  }
0x1028   :  { %31 = sbr.rel (!%p29_p4) target bundleno = 6 (0x6), region = 145 }

</bundles_post_ra>
